<compile_context>
chip_gen: v7x
topology: tpu7x:2x2x1
jax: 0.10.0
libtpu: 0.0.40
codegen_flags: <defaults>
</compile_context>

<pallas_src>
import functools

import jax
import jax.numpy as jnp
from jax.experimental import pallas as pl
from jax.experimental.pallas import tpu as pltpu

# ----------------------------- config (small synthetic sizes) -----------------------
VOCAB = 512
EMBED = 32
MAX_LEN = 64
PAD_ID, CLS_ID, SEP_ID, MASK_ID = 0, 1, 2, 3
SELECT_PROB = 0.15

GEN = dict(hidden=32, mlp=64, heads=1, layers=2)    # gen_hidden == embed -> no proj, tied MLM head
DISC = dict(hidden=64, mlp=128, heads=4, layers=2)  # disc_hidden != embed -> embed_proj

_PACKED_KEYS = ("wqkv", "wo", "w1", "w2", "bqkv", "vec", "b1")


# ----------------------------- kernel helpers ----------------------------------------
def _layernorm(x, gamma, beta, eps=1e-5):
    mu = jnp.mean(x, axis=-1, keepdims=True)
    var = jnp.mean((x - mu) ** 2, axis=-1, keepdims=True)
    return (x - mu) * jax.lax.rsqrt(var + eps) * gamma + beta


def _bdot(a_f32, w_bf16):
    """bf16 MXU operands, f32 accumulation."""
    return jnp.dot(a_f32.astype(jnp.bfloat16), w_bf16,
                   preferred_element_type=jnp.float32)


# ----------------------------- fused encoder-stack kernel ----------------------------
def _stack_kernel(n_heads, n_layers, has_proj, head_mode, *refs):
    """Grid = (batch,).  One grid step = embed_proj? + all layers + head for one sequence.

    refs = [x, pad_bias, (proj_w, proj_b)?, wqkv, wo, w1, w2, bqkv, vec, b1,
            head_w, head_b, out]
    """
    i = 0
    x_ref = refs[i]; i += 1                 # (1, S, E_in)
    bias_ref = refs[i]; i += 1              # (1, 1, S)
    if has_proj:
        pw_ref = refs[i]; pb_ref = refs[i + 1]; i += 2
    (wqkv_ref, wo_ref, w1_ref, w2_ref,
     bqkv_ref, vec_ref, b1_ref) = refs[i:i + 7]; i += 7
    hw_ref = refs[i]; hb_ref = refs[i + 1]; i += 2
    out_ref = refs[i]

    x = x_ref[0].astype(jnp.float32)        # (S, E_in)
    if has_proj:
        x = _bdot(x, pw_ref[...]) + pb_ref[...]      # (S, H)
    bias = bias_ref[0]                       # (1, S), -1e9 on PAD keys (f32)

    S = x.shape[0]
    H = wo_ref.shape[-1]
    dh = H // n_heads

    # ---- all encoder layers, statically unrolled (L is small & static) --------------
    for l in range(n_layers):
        wqkv = wqkv_ref[l]                   # (H, 3H) bf16  (wq already scaled by 1/sqrt(dh))
        bqkv = bqkv_ref[l]                   # (1, 3H) f32
        vec = vec_ref[l]                     # (6, H)  f32: [bo, g1, be1, b2, g2, be2]
        bo, g1, be1 = vec[0:1], vec[1:2], vec[2:3]
        b2, g2, be2 = vec[3:4], vec[4:5], vec[5:6]

        # --- fused QKV projection (one MXU pass, one bf16 cast of x) -----------------
        xb = x.astype(jnp.bfloat16)
        qkv = jnp.dot(xb, wqkv, preferred_element_type=jnp.float32) + bqkv   # (S, 3H)
        q = qkv[:, :H]
        k = qkv[:, H:2 * H]
        v = qkv[:, 2 * H:]

        # --- self attention -----------------------------------------------------------
        if n_heads == 1:
            qh = q.astype(jnp.bfloat16)
            kh = k.astype(jnp.bfloat16)
            vh = v.astype(jnp.bfloat16)
            s = jax.lax.dot_general(qh, kh, (((1,), (1,)), ((), ())),
                                    preferred_element_type=jnp.float32)      # (S, S)
            s = s + bias
            s = s - jnp.max(s, axis=-1, keepdims=True)
            p = jnp.exp(s)
            p = p * pl.reciprocal(jnp.sum(p, axis=-1, keepdims=True), approx=True)
            ctx = jnp.dot(p.astype(jnp.bfloat16), vh,
                          preferred_element_type=jnp.float32)                # (S, H)
        else:
            # leading-batch (head-major) einsums; one relayout per tensor at dh=16 is tiny
            qh = q.reshape(S, n_heads, dh).transpose(1, 0, 2).astype(jnp.bfloat16)
            kh = k.reshape(S, n_heads, dh).transpose(1, 0, 2).astype(jnp.bfloat16)
            vh = v.reshape(S, n_heads, dh).transpose(1, 0, 2).astype(jnp.bfloat16)
            s = jnp.einsum("hqd,hkd->hqk", qh, kh,
                           preferred_element_type=jnp.float32)               # (nh, S, S)
            s = s + bias
            s = s - jnp.max(s, axis=-1, keepdims=True)
            p = jnp.exp(s)
            p = p * pl.reciprocal(jnp.sum(p, axis=-1, keepdims=True), approx=True)
            ctx = jnp.einsum("hqk,hkd->hqd", p.astype(jnp.bfloat16), vh,
                             preferred_element_type=jnp.float32)             # (nh, S, dh)
            ctx = ctx.transpose(1, 0, 2).reshape(S, H)

        attn = _bdot(ctx, wo_ref[l]) + bo
        x = _layernorm(x + attn, g1, be1)

        # --- feed forward --------------------------------------------------------------
        h1 = jnp.dot(x.astype(jnp.bfloat16), w1_ref[l],
                     preferred_element_type=jnp.float32) + b1_ref[l]
        # TODO(synk): torch nn.GELU is exact erf; tanh approximation kept (erf lowering not guaranteed in Mosaic).
        h1 = jax.nn.gelu(h1)
        ffn = _bdot(h1, w2_ref[l]) + b2
        x = _layernorm(x + ffn, g2, be2)

    # ---- fused head (lane-dense output: S on the last axis) --------------------------
    if head_mode == "mlm_argmax":
        logits = _bdot(x, hw_ref[...]) + hb_ref[...]              # (S, V)
        # TODO(synk): at realistic VOCAB (~30k) tile the vocab axis + online argmax (v7x VMEM).
        V = logits.shape[-1]
        col = jax.lax.broadcasted_iota(jnp.int32, logits.shape, 1)
        m = jnp.max(logits, axis=-1, keepdims=True)
        idx = jnp.min(jnp.where(logits == m, col, V), axis=-1)    # (S,) first argmax index
        out_ref[0] = idx.reshape(1, S).astype(out_ref.dtype)      # (1, S) int32
    else:  # "rtd": head weight stored transposed (2, H) -> compute logits already as (2, S)
        lg = jax.lax.dot_general(hw_ref[...], x.astype(jnp.bfloat16),
                                 (((1,), (1,)), ((), ())),
                                 preferred_element_type=jnp.float32)         # (2, S)
        out_ref[0] = (lg + hb_ref[...]).astype(out_ref.dtype)                # (2, S) f32


# ----------------------------- Pallas wrapper ----------------------------------------
def encoder_stack(x, pad_bias, lp, n_heads, head_w, head_b, head_mode,
                  proj_w=None, proj_b=None):
    """Fused embed_proj (optional) + all L encoder layers + head, one pallas_call, grid=(B,)."""
    B, S, E_in = x.shape
    L = lp["wqkv"].shape[0]
    has_proj = proj_w is not None

    batch3 = lambda b: (b, 0, 0)
    const2 = lambda b: (0, 0)
    const3 = lambda b: (0, 0, 0)

    in_specs = [pl.BlockSpec((1, S, E_in), batch3),
                pl.BlockSpec((1, 1, S), batch3)]
    operands = [x, pad_bias]
    if has_proj:
        in_specs += [pl.BlockSpec(proj_w.shape, const2),
                     pl.BlockSpec(proj_b.shape, const2)]
        operands += [proj_w, proj_b]
    for name in _PACKED_KEYS:                       # full stacked (L, ...) blocks, constant index
        a = lp[name]
        in_specs.append(pl.BlockSpec(a.shape, const3))
        operands.append(a)
    in_specs += [pl.BlockSpec(head_w.shape, const2),
                 pl.BlockSpec(head_b.shape, const2)]
    operands += [head_w, head_b]

    if head_mode == "mlm_argmax":
        out_shape = jax.ShapeDtypeStruct((B, 1, S), jnp.int32)    # lane-dense: S last
        out_spec = pl.BlockSpec((1, 1, S), batch3)
    else:
        out_shape = jax.ShapeDtypeStruct((B, 2, S), jnp.float32)  # lane-dense: S last
        out_spec = pl.BlockSpec((1, 2, S), batch3)

    kernel = functools.partial(_stack_kernel, n_heads, L, has_proj, head_mode)
    return pl.pallas_call(
        kernel,
        out_shape=out_shape,
        grid=(B,),
        in_specs=in_specs,
        out_specs=out_spec,
        compiler_params=pltpu.CompilerParams(
            dimension_semantics=("parallel",),          # batch splits across TCs on v7x
            vmem_limit_bytes=32 * 1024 * 1024),
    )(*operands)


# ----------------------------- parameter init ---------------------------------------
def _dense(key, fan_in, fan_out):
    w = jax.random.normal(key, (fan_in, fan_out), jnp.float32) * 0.02
    b = jnp.zeros((1, fan_out), jnp.float32)
    return w, b


def _stacked_layer_params(key, hidden, mlp, n_layers, n_heads):
    """Packed per-layer params: wqkv(L,H,3H) wo(L,H,H) w1(L,H,M) w2(L,M,H) bf16;
    bqkv(L,1,3H) vec(L,6,H) b1(L,1,M) f32.  1/sqrt(dh) folded into wq/bq."""
    scale = 1.0 / ((hidden // n_heads) ** 0.5)
    wqkv_l, wo_l, w1_l, w2_l, bqkv_l, vec_l, b1_l = [], [], [], [], [], [], []
    for k in jax.random.split(key, n_layers):
        ks = jax.random.split(k, 6)
        wq, bq = _dense(ks[0], hidden, hidden)
        wk, bk = _dense(ks[1], hidden, hidden)
        wv, bv = _dense(ks[2], hidden, hidden)
        wo, bo = _dense(ks[3], hidden, hidden)
        w1, b1 = _dense(ks[4], hidden, mlp)
        w2, b2 = _dense(ks[5], mlp, hidden)
        wq, bq = wq * scale, bq * scale                 # fold softmax scale into Q proj
        g1 = jnp.ones((1, hidden), jnp.float32)
        be1 = jnp.zeros((1, hidden), jnp.float32)
        g2 = jnp.ones((1, hidden), jnp.float32)
        be2 = jnp.zeros((1, hidden), jnp.float32)
        wqkv_l.append(jnp.concatenate([wq, wk, wv], axis=1))        # (H, 3H)
        bqkv_l.append(jnp.concatenate([bq, bk, bv], axis=1))        # (1, 3H)
        wo_l.append(wo); w1_l.append(w1); w2_l.append(w2); b1_l.append(b1)
        vec_l.append(jnp.concatenate([bo, g1, be1, b2, g2, be2], axis=0))   # (6, H)
    return dict(
        wqkv=jnp.stack(wqkv_l).astype(jnp.bfloat16),
        wo=jnp.stack(wo_l).astype(jnp.bfloat16),
        w1=jnp.stack(w1_l).astype(jnp.bfloat16),
        w2=jnp.stack(w2_l).astype(jnp.bfloat16),
        bqkv=jnp.stack(bqkv_l),
        vec=jnp.stack(vec_l),
        b1=jnp.stack(b1_l),
    )


def init_params(key):
    ks = jax.random.split(key, 10)
    tok_emb = jax.random.normal(ks[0], (VOCAB, EMBED), jnp.float32) * 0.02
    tok_emb = tok_emb.at[PAD_ID].set(0.0)                 # nn.Embedding padding_idx
    pos_emb = jax.random.normal(ks[1], (MAX_LEN, EMBED), jnp.float32) * 0.02
    seg_gen = jax.random.normal(ks[2], (3, EMBED), jnp.float32) * 0.02
    seg_gen = seg_gen.at[PAD_ID].set(0.0)
    seg_disc = jax.random.normal(ks[3], (3, EMBED), jnp.float32) * 0.02
    seg_disc = seg_disc.at[PAD_ID].set(0.0)

    gen_layers = _stacked_layer_params(ks[4], GEN["hidden"], GEN["mlp"],
                                       GEN["layers"], GEN["heads"])
    disc_layers = _stacked_layer_params(ks[5], DISC["hidden"], DISC["mlp"],
                                        DISC["layers"], DISC["heads"])

    embed_proj_w, embed_proj_b = _dense(ks[6], EMBED, DISC["hidden"])   # disc only
    rtd_w, rtd_b = _dense(ks[7], DISC["hidden"], 2)
    mlm_b = jnp.zeros((1, VOCAB), jnp.float32)            # MLM head weight tied to tok_emb

    return dict(tok_emb=tok_emb, pos_emb=pos_emb, seg_gen=seg_gen, seg_disc=seg_disc,
                gen_layers=gen_layers, disc_layers=disc_layers,
                embed_proj_w=embed_proj_w.astype(jnp.bfloat16), embed_proj_b=embed_proj_b,
                rtd_wT=rtd_w.T.astype(jnp.bfloat16),       # (2, H): logits produced lane-dense
                rtd_bT=rtd_b.T,                            # (2, 1)
                mlm_b=mlm_b,
                tok_emb_T=tok_emb.T.astype(jnp.bfloat16))  # tied MLM head weight, transposed once


# ----------------------------- model forward -----------------------------------------
def _embed(params, seq, seg_ids, seg_table):
    B, S = seq.shape
    x = params["tok_emb"][seq]                        # (B,S,E)  gather glue
    x = x + params["pos_emb"][:S][None, :, :]
    x = x + seg_table[seg_ids]
    return x                                          # dropout: identity (eval)


def _pad_bias(seq):
    # -1e9 additive bias on PAD key positions, kept in f32 (applied post-matmul).
    return (seq == PAD_ID).astype(jnp.float32)[:, None, :] * (-1e9)   # (B,1,S)


def generator_forward(params, seq, seg_ids):
    x = _embed(params, seq, seg_ids, params["seg_gen"])        # gen hidden == embed -> no proj
    out = encoder_stack(x, _pad_bias(seq), params["gen_layers"], GEN["heads"],
                        params["tok_emb_T"], params["mlm_b"], "mlm_argmax")
    return out[:, 0, :]                                         # (B,S) int32 argmax token ids


def discriminator_forward(params, seq, seg_ids):
    x = _embed(params, seq, seg_ids, params["seg_disc"])
    out = encoder_stack(x, _pad_bias(seq), params["disc_layers"], DISC["heads"],
                        params["rtd_wT"], params["rtd_bT"], "rtd",
                        proj_w=params["embed_proj_w"], proj_b=params["embed_proj_b"])
    return jnp.transpose(out, (0, 2, 1))                        # (B,S,2) f32


def electra_forward(params, token_ids, seg_ids, mask_key):
    # MaskedLanguageModel: select_prob=0.15, mask_prob=1, randomize_prob=0,
    # never masking [CLS]/[SEP]/[MASK]/[PAD]
    special = ((token_ids == PAD_ID) | (token_ids == CLS_ID) |
               (token_ids == SEP_ID) | (token_ids == MASK_ID))
    select = (jax.random.uniform(mask_key, token_ids.shape) < SELECT_PROB) & (~special)
    masked_ids = jnp.where(select, MASK_ID, token_ids)

    # TODO(synk): reference forward feeds generator output straight to disc (broken code);
    # standard ELECTRA samples replacements — we use argmax of the generator logits (fused in-kernel).
    sampled = generator_forward(params, masked_ids, seg_ids).astype(token_ids.dtype)  # (B,S)
    corrupted = jnp.where(select, sampled, token_ids)

    disc_logits = discriminator_forward(params, corrupted, seg_ids)   # (B,S,2)
    return disc_logits


# ----------------------------- main ---------------------------------------------------
if __name__ == "__main__":
    root = jax.random.PRNGKey(0)
    pkey, dkey, mkey = jax.random.split(root, 3)

    params = init_params(pkey)

    B, S = 2, 8
    token_ids = jax.random.randint(dkey, (B, S), 4, VOCAB, dtype=jnp.int32)
    token_ids = token_ids.at[:, 0].set(CLS_ID)
    token_ids = token_ids.at[0, -1].set(SEP_ID)
    token_ids = token_ids.at[1, 5].set(SEP_ID)
    token_ids = token_ids.at[1, 6:].set(PAD_ID)          # exercise pad masking
    seg_ids = jnp.where(token_ids == PAD_ID, 0, 1).astype(jnp.int32)

    out = electra_forward(params, token_ids, seg_ids, mkey)
    out = jax.block_until_ready(out)
    assert out.shape == (B, S, 2) and out.dtype == jnp.float32
    assert bool(jnp.all(jnp.isfinite(out)))
    print("KERNEL_OK")
</pallas_src>

<mosaic_0001>
module attributes {stable_mosaic.version = 11 : i64} {
  func.func @_stack_kernel(%arg0: i32, %arg1: memref<1x8x32xf32, #tpu.memory_space<vmem>>, %arg2: memref<1x1x8xf32, #tpu.memory_space<vmem>>, %arg3: memref<2x32x96xbf16, #tpu.memory_space<vmem>>, %arg4: memref<2x32x32xbf16, #tpu.memory_space<vmem>>, %arg5: memref<2x32x64xbf16, #tpu.memory_space<vmem>>, %arg6: memref<2x64x32xbf16, #tpu.memory_space<vmem>>, %arg7: memref<2x1x96xf32, #tpu.memory_space<vmem>>, %arg8: memref<2x6x32xf32, #tpu.memory_space<vmem>>, %arg9: memref<2x1x64xf32, #tpu.memory_space<vmem>>, %arg10: memref<32x512xbf16, #tpu.memory_space<vmem>>, %arg11: memref<1x512xf32, #tpu.memory_space<vmem>>, %arg12: memref<1x1x8xi32, #tpu.memory_space<vmem>>) attributes {dimension_semantics = [#tpu.dimension_semantics<parallel>], iteration_bounds = array<i64: 2>, scalar_prefetch = 0 : i64, scratch_operands = 0 : i64, tpu.core_type = #tpu.core_type<tc>, window_params = [{transform_indices = @transform_0, window_bounds = array<i64: 1, 8, 32>}, {transform_indices = @transform_1, window_bounds = array<i64: 1, 1, 8>}, {pipeline_mode = #tpu.pipeline_mode<synchronous>, transform_indices = @transform_2, window_bounds = array<i64: 2, 32, 96>}, {pipeline_mode = #tpu.pipeline_mode<synchronous>, transform_indices = @transform_3, window_bounds = array<i64: 2, 32, 32>}, {pipeline_mode = #tpu.pipeline_mode<synchronous>, transform_indices = @transform_4, window_bounds = array<i64: 2, 32, 64>}, {pipeline_mode = #tpu.pipeline_mode<synchronous>, transform_indices = @transform_5, window_bounds = array<i64: 2, 64, 32>}, {pipeline_mode = #tpu.pipeline_mode<synchronous>, transform_indices = @transform_6, window_bounds = array<i64: 2, 1, 96>}, {pipeline_mode = #tpu.pipeline_mode<synchronous>, transform_indices = @transform_7, window_bounds = array<i64: 2, 6, 32>}, {pipeline_mode = #tpu.pipeline_mode<synchronous>, transform_indices = @transform_8, window_bounds = array<i64: 2, 1, 64>}, {pipeline_mode = #tpu.pipeline_mode<synchronous>, transform_indices = @transform_9, window_bounds = array<i64: 32, 512>}, {pipeline_mode = #tpu.pipeline_mode<synchronous>, transform_indices = @transform_10, window_bounds = array<i64: 1, 512>}, {transform_indices = @transform_11, window_bounds = array<i64: 1, 1, 8>}]} {
    %c0 = arith.constant 0 : index
    %c0_0 = arith.constant 0 : index
    %c0_1 = arith.constant 0 : index
    %0 = vector.load %arg1[%c0, %c0_0, %c0_1] : memref<1x8x32xf32, #tpu.memory_space<vmem>>, vector<1x8x32xf32>
    %1 = vector.shape_cast %0 : vector<1x8x32xf32> to vector<8x32xf32>
    %c0_2 = arith.constant 0 : index
    %c0_3 = arith.constant 0 : index
    %c0_4 = arith.constant 0 : index
    %2 = vector.load %arg2[%c0_2, %c0_3, %c0_4] : memref<1x1x8xf32, #tpu.memory_space<vmem>>, vector<1x1x8xf32>
    %3 = vector.shape_cast %2 : vector<1x1x8xf32> to vector<1x8xf32>
    %c0_5 = arith.constant 0 : index
    %c0_6 = arith.constant 0 : index
    %c0_7 = arith.constant 0 : index
    %4 = vector.load %arg3[%c0_5, %c0_6, %c0_7] : memref<2x32x96xbf16, #tpu.memory_space<vmem>>, vector<1x32x96xbf16>
    %5 = vector.shape_cast %4 : vector<1x32x96xbf16> to vector<32x96xbf16>
    %c0_8 = arith.constant 0 : index
    %c0_9 = arith.constant 0 : index
    %c0_10 = arith.constant 0 : index
    %6 = vector.load %arg7[%c0_8, %c0_9, %c0_10] : memref<2x1x96xf32, #tpu.memory_space<vmem>>, vector<1x1x96xf32>
    %7 = vector.shape_cast %6 : vector<1x1x96xf32> to vector<1x96xf32>
    %c0_11 = arith.constant 0 : index
    %c0_12 = arith.constant 0 : index
    %c0_13 = arith.constant 0 : index
    %8 = vector.load %arg8[%c0_11, %c0_12, %c0_13] : memref<2x6x32xf32, #tpu.memory_space<vmem>>, vector<1x6x32xf32>
    %9 = vector.shape_cast %8 : vector<1x6x32xf32> to vector<6x32xf32>
    %10 = vector.extract_strided_slice %9 {offsets = [0, 0], sizes = [1, 32], strides = [1, 1]} : vector<6x32xf32> to vector<1x32xf32>
    %11 = vector.extract_strided_slice %9 {offsets = [1, 0], sizes = [1, 32], strides = [1, 1]} : vector<6x32xf32> to vector<1x32xf32>
    %12 = vector.extract_strided_slice %9 {offsets = [2, 0], sizes = [1, 32], strides = [1, 1]} : vector<6x32xf32> to vector<1x32xf32>
    %13 = vector.extract_strided_slice %9 {offsets = [3, 0], sizes = [1, 32], strides = [1, 1]} : vector<6x32xf32> to vector<1x32xf32>
    %14 = vector.extract_strided_slice %9 {offsets = [4, 0], sizes = [1, 32], strides = [1, 1]} : vector<6x32xf32> to vector<1x32xf32>
    %15 = vector.extract_strided_slice %9 {offsets = [5, 0], sizes = [1, 32], strides = [1, 1]} : vector<6x32xf32> to vector<1x32xf32>
    %16 = arith.truncf %1 : vector<8x32xf32> to vector<8x32xbf16>
    %cst = arith.constant dense<0.000000e+00> : vector<8x96xf32>
    %17 = tpu.matmul %16, %5, %cst {dimension_numbers = #tpu.dot_dimension_numbers<[1], [0], [0], [1], [0, 0, 1, 1], [], []>} : vector<8x32xbf16>, vector<32x96xbf16>, vector<8x96xf32> -> vector<8x96xf32>
    %18 = vector.broadcast %7 : vector<1x96xf32> to vector<8x96xf32>
    %19 = arith.addf %17, %18 : vector<8x96xf32>
    %20 = vector.extract_strided_slice %19 {offsets = [0, 0], sizes = [8, 32], strides = [1, 1]} : vector<8x96xf32> to vector<8x32xf32>
    %21 = vector.extract_strided_slice %19 {offsets = [0, 32], sizes = [8, 32], strides = [1, 1]} : vector<8x96xf32> to vector<8x32xf32>
    %22 = vector.extract_strided_slice %19 {offsets = [0, 64], sizes = [8, 32], strides = [1, 1]} : vector<8x96xf32> to vector<8x32xf32>
    %23 = arith.truncf %20 : vector<8x32xf32> to vector<8x32xbf16>
    %24 = arith.truncf %21 : vector<8x32xf32> to vector<8x32xbf16>
    %25 = arith.truncf %22 : vector<8x32xf32> to vector<8x32xbf16>
    %cst_14 = arith.constant dense<0.000000e+00> : vector<8x8xf32>
    %26 = tpu.matmul %23, %24, %cst_14 {dimension_numbers = #tpu.dot_dimension_numbers<[1], [1], [0], [0], [0, 0, 1, 0], [], []>} : vector<8x32xbf16>, vector<8x32xbf16>, vector<8x8xf32> -> vector<8x8xf32>
    %27 = vector.broadcast %3 : vector<1x8xf32> to vector<8x8xf32>
    %28 = arith.addf %26, %27 : vector<8x8xf32>
    %cst_15 = arith.constant dense<0xFF800000> : vector<8xf32>
    %29 = vector.multi_reduction <maximumf>, %28, %cst_15 [1] : vector<8x8xf32> to vector<8xf32>
    %30 = vector.shape_cast %29 : vector<8xf32> to vector<8x1xf32>
    %31 = vector.broadcast %30 : vector<8x1xf32> to vector<8x8xf32>
    %32 = arith.subf %28, %31 : vector<8x8xf32>
    %33 = math.exp %32 : vector<8x8xf32>
    %cst_16 = arith.constant dense<0.000000e+00> : vector<8xf32>
    %34 = vector.multi_reduction <add>, %33, %cst_16 [1] : vector<8x8xf32> to vector<8xf32>
    %35 = vector.shape_cast %34 : vector<8xf32> to vector<8x1xf32>
    %36 = tpu.reciprocal %35 {approx = true} : vector<8x1xf32> -> vector<8x1xf32>
    %37 = vector.broadcast %36 : vector<8x1xf32> to vector<8x8xf32>
    %38 = arith.mulf %33, %37 : vector<8x8xf32>
    %39 = arith.truncf %38 : vector<8x8xf32> to vector<8x8xbf16>
    %cst_17 = arith.constant dense<0.000000e+00> : vector<8x32xf32>
    %40 = tpu.matmul %39, %25, %cst_17 {dimension_numbers = #tpu.dot_dimension_numbers<[1], [0], [0], [1], [0, 0, 1, 1], [], []>} : vector<8x8xbf16>, vector<8x32xbf16>, vector<8x32xf32> -> vector<8x32xf32>
    %c0_18 = arith.constant 0 : index
    %c0_19 = arith.constant 0 : index
    %c0_20 = arith.constant 0 : index
    %41 = vector.load %arg4[%c0_18, %c0_19, %c0_20] : memref<2x32x32xbf16, #tpu.memory_space<vmem>>, vector<1x32x32xbf16>
    %42 = vector.shape_cast %41 : vector<1x32x32xbf16> to vector<32x32xbf16>
    %43 = arith.truncf %40 : vector<8x32xf32> to vector<8x32xbf16>
    %cst_21 = arith.constant dense<0.000000e+00> : vector<8x32xf32>
    %44 = tpu.matmul %43, %42, %cst_21 {dimension_numbers = #tpu.dot_dimension_numbers<[1], [0], [0], [1], [0, 0, 1, 1], [], []>} : vector<8x32xbf16>, vector<32x32xbf16>, vector<8x32xf32> -> vector<8x32xf32>
    %45 = vector.broadcast %10 : vector<1x32xf32> to vector<8x32xf32>
    %46 = arith.addf %44, %45 : vector<8x32xf32>
    %47 = arith.addf %1, %46 : vector<8x32xf32>
    %cst_22 = arith.constant dense<0.000000e+00> : vector<8xf32>
    %48 = vector.multi_reduction <add>, %47, %cst_22 [1] : vector<8x32xf32> to vector<8xf32>
    %49 = vector.shape_cast %48 : vector<8xf32> to vector<8x1xf32>
    %cst_23 = arith.constant 3.200000e+01 : f32
    %50 = vector.broadcast %cst_23 : f32 to vector<8x1xf32>
    %51 = arith.divf %49, %50 : vector<8x1xf32>
    %52 = vector.broadcast %51 : vector<8x1xf32> to vector<8x32xf32>
    %53 = arith.subf %47, %52 : vector<8x32xf32>
    %54 = arith.mulf %53, %53 : vector<8x32xf32>
    %cst_24 = arith.constant dense<0.000000e+00> : vector<8xf32>
    %55 = vector.multi_reduction <add>, %54, %cst_24 [1] : vector<8x32xf32> to vector<8xf32>
    %56 = vector.shape_cast %55 : vector<8xf32> to vector<8x1xf32>
    %cst_25 = arith.constant 3.200000e+01 : f32
    %57 = vector.broadcast %cst_25 : f32 to vector<8x1xf32>
    %58 = arith.divf %56, %57 : vector<8x1xf32>
    %59 = vector.broadcast %51 : vector<8x1xf32> to vector<8x32xf32>
    %60 = arith.subf %47, %59 : vector<8x32xf32>
    %cst_26 = arith.constant 9.99999974E-6 : f32
    %61 = vector.broadcast %cst_26 : f32 to vector<8x1xf32>
    %62 = arith.addf %58, %61 : vector<8x1xf32>
    %63 = math.rsqrt %62 : vector<8x1xf32>
    %64 = vector.broadcast %63 : vector<8x1xf32> to vector<8x32xf32>
    %65 = arith.mulf %60, %64 : vector<8x32xf32>
    %66 = vector.broadcast %11 : vector<1x32xf32> to vector<8x32xf32>
    %67 = arith.mulf %65, %66 : vector<8x32xf32>
    %68 = vector.broadcast %12 : vector<1x32xf32> to vector<8x32xf32>
    %69 = arith.addf %67, %68 : vector<8x32xf32>
    %70 = arith.truncf %69 : vector<8x32xf32> to vector<8x32xbf16>
    %c0_27 = arith.constant 0 : index
    %c0_28 = arith.constant 0 : index
    %c0_29 = arith.constant 0 : index
    %71 = vector.load %arg5[%c0_27, %c0_28, %c0_29] : memref<2x32x64xbf16, #tpu.memory_space<vmem>>, vector<1x32x64xbf16>
    %72 = vector.shape_cast %71 : vector<1x32x64xbf16> to vector<32x64xbf16>
    %cst_30 = arith.constant dense<0.000000e+00> : vector<8x64xf32>
    %73 = tpu.matmul %70, %72, %cst_30 {dimension_numbers = #tpu.dot_dimension_numbers<[1], [0], [0], [1], [0, 0, 1, 1], [], []>} : vector<8x32xbf16>, vector<32x64xbf16>, vector<8x64xf32> -> vector<8x64xf32>
    %c0_31 = arith.constant 0 : index
    %c0_32 = arith.constant 0 : index
    %c0_33 = arith.constant 0 : index
    %74 = vector.load %arg9[%c0_31, %c0_32, %c0_33] : memref<2x1x64xf32, #tpu.memory_space<vmem>>, vector<1x1x64xf32>
    %75 = vector.shape_cast %74 : vector<1x1x64xf32> to vector<1x64xf32>
    %76 = vector.broadcast %75 : vector<1x64xf32> to vector<8x64xf32>
    %77 = arith.addf %73, %76 : vector<8x64xf32>
    %78 = arith.mulf %77, %77 : vector<8x64xf32>
    %79 = arith.mulf %77, %78 : vector<8x64xf32>
    %cst_34 = arith.constant 4.471500e-02 : f32
    %80 = vector.broadcast %cst_34 : f32 to vector<8x64xf32>
    %81 = arith.mulf %80, %79 : vector<8x64xf32>
    %82 = arith.addf %77, %81 : vector<8x64xf32>
    %cst_35 = arith.constant 0.797884583 : f32
    %83 = vector.broadcast %cst_35 : f32 to vector<8x64xf32>
    %84 = arith.mulf %83, %82 : vector<8x64xf32>
    %85 = math.tanh %84 : vector<8x64xf32>
    %cst_36 = arith.constant 1.000000e+00 : f32
    %86 = vector.broadcast %cst_36 : f32 to vector<8x64xf32>
    %87 = arith.addf %86, %85 : vector<8x64xf32>
    %cst_37 = arith.constant 5.000000e-01 : f32
    %88 = vector.broadcast %cst_37 : f32 to vector<8x64xf32>
    %89 = arith.mulf %88, %87 : vector<8x64xf32>
    %90 = arith.mulf %77, %89 : vector<8x64xf32>
    %c0_38 = arith.constant 0 : index
    %c0_39 = arith.constant 0 : index
    %c0_40 = arith.constant 0 : index
    %91 = vector.load %arg6[%c0_38, %c0_39, %c0_40] : memref<2x64x32xbf16, #tpu.memory_space<vmem>>, vector<1x64x32xbf16>
    %92 = vector.shape_cast %91 : vector<1x64x32xbf16> to vector<64x32xbf16>
    %93 = arith.truncf %90 : vector<8x64xf32> to vector<8x64xbf16>
    %cst_41 = arith.constant dense<0.000000e+00> : vector<8x32xf32>
    %94 = tpu.matmul %93, %92, %cst_41 {dimension_numbers = #tpu.dot_dimension_numbers<[1], [0], [0], [1], [0, 0, 1, 1], [], []>} : vector<8x64xbf16>, vector<64x32xbf16>, vector<8x32xf32> -> vector<8x32xf32>
    %95 = vector.broadcast %13 : vector<1x32xf32> to vector<8x32xf32>
    %96 = arith.addf %94, %95 : vector<8x32xf32>
    %97 = arith.addf %69, %96 : vector<8x32xf32>
    %cst_42 = arith.constant dense<0.000000e+00> : vector<8xf32>
    %98 = vector.multi_reduction <add>, %97, %cst_42 [1] : vector<8x32xf32> to vector<8xf32>
    %99 = vector.shape_cast %98 : vector<8xf32> to vector<8x1xf32>
    %cst_43 = arith.constant 3.200000e+01 : f32
    %100 = vector.broadcast %cst_43 : f32 to vector<8x1xf32>
    %101 = arith.divf %99, %100 : vector<8x1xf32>
    %102 = vector.broadcast %101 : vector<8x1xf32> to vector<8x32xf32>
    %103 = arith.subf %97, %102 : vector<8x32xf32>
    %104 = arith.mulf %103, %103 : vector<8x32xf32>
    %cst_44 = arith.constant dense<0.000000e+00> : vector<8xf32>
    %105 = vector.multi_reduction <add>, %104, %cst_44 [1] : vector<8x32xf32> to vector<8xf32>
    %106 = vector.shape_cast %105 : vector<8xf32> to vector<8x1xf32>
    %cst_45 = arith.constant 3.200000e+01 : f32
    %107 = vector.broadcast %cst_45 : f32 to vector<8x1xf32>
    %108 = arith.divf %106, %107 : vector<8x1xf32>
    %109 = vector.broadcast %101 : vector<8x1xf32> to vector<8x32xf32>
    %110 = arith.subf %97, %109 : vector<8x32xf32>
    %cst_46 = arith.constant 9.99999974E-6 : f32
    %111 = vector.broadcast %cst_46 : f32 to vector<8x1xf32>
    %112 = arith.addf %108, %111 : vector<8x1xf32>
    %113 = math.rsqrt %112 : vector<8x1xf32>
    %114 = vector.broadcast %113 : vector<8x1xf32> to vector<8x32xf32>
    %115 = arith.mulf %110, %114 : vector<8x32xf32>
    %116 = vector.broadcast %14 : vector<1x32xf32> to vector<8x32xf32>
    %117 = arith.mulf %115, %116 : vector<8x32xf32>
    %118 = vector.broadcast %15 : vector<1x32xf32> to vector<8x32xf32>
    %119 = arith.addf %117, %118 : vector<8x32xf32>
    %c1 = arith.constant 1 : index
    %c0_47 = arith.constant 0 : index
    %c0_48 = arith.constant 0 : index
    %120 = vector.load %arg3[%c1, %c0_47, %c0_48] : memref<2x32x96xbf16, #tpu.memory_space<vmem>>, vector<1x32x96xbf16>
    %121 = vector.shape_cast %120 : vector<1x32x96xbf16> to vector<32x96xbf16>
    %c1_49 = arith.constant 1 : index
    %c0_50 = arith.constant 0 : index
    %c0_51 = arith.constant 0 : index
    %122 = vector.load %arg7[%c1_49, %c0_50, %c0_51] : memref<2x1x96xf32, #tpu.memory_space<vmem>>, vector<1x1x96xf32>
    %123 = vector.shape_cast %122 : vector<1x1x96xf32> to vector<1x96xf32>
    %c1_52 = arith.constant 1 : index
    %c0_53 = arith.constant 0 : index
    %c0_54 = arith.constant 0 : index
    %124 = vector.load %arg8[%c1_52, %c0_53, %c0_54] : memref<2x6x32xf32, #tpu.memory_space<vmem>>, vector<1x6x32xf32>
    %125 = vector.shape_cast %124 : vector<1x6x32xf32> to vector<6x32xf32>
    %126 = vector.extract_strided_slice %125 {offsets = [0, 0], sizes = [1, 32], strides = [1, 1]} : vector<6x32xf32> to vector<1x32xf32>
    %127 = vector.extract_strided_slice %125 {offsets = [1, 0], sizes = [1, 32], strides = [1, 1]} : vector<6x32xf32> to vector<1x32xf32>
    %128 = vector.extract_strided_slice %125 {offsets = [2, 0], sizes = [1, 32], strides = [1, 1]} : vector<6x32xf32> to vector<1x32xf32>
    %129 = vector.extract_strided_slice %125 {offsets = [3, 0], sizes = [1, 32], strides = [1, 1]} : vector<6x32xf32> to vector<1x32xf32>
    %130 = vector.extract_strided_slice %125 {offsets = [4, 0], sizes = [1, 32], strides = [1, 1]} : vector<6x32xf32> to vector<1x32xf32>
    %131 = vector.extract_strided_slice %125 {offsets = [5, 0], sizes = [1, 32], strides = [1, 1]} : vector<6x32xf32> to vector<1x32xf32>
    %132 = arith.truncf %119 : vector<8x32xf32> to vector<8x32xbf16>
    %cst_55 = arith.constant dense<0.000000e+00> : vector<8x96xf32>
    %133 = tpu.matmul %132, %121, %cst_55 {dimension_numbers = #tpu.dot_dimension_numbers<[1], [0], [0], [1], [0, 0, 1, 1], [], []>} : vector<8x32xbf16>, vector<32x96xbf16>, vector<8x96xf32> -> vector<8x96xf32>
    %134 = vector.broadcast %123 : vector<1x96xf32> to vector<8x96xf32>
    %135 = arith.addf %133, %134 : vector<8x96xf32>
    %136 = vector.extract_strided_slice %135 {offsets = [0, 0], sizes = [8, 32], strides = [1, 1]} : vector<8x96xf32> to vector<8x32xf32>
    %137 = vector.extract_strided_slice %135 {offsets = [0, 32], sizes = [8, 32], strides = [1, 1]} : vector<8x96xf32> to vector<8x32xf32>
    %138 = vector.extract_strided_slice %135 {offsets = [0, 64], sizes = [8, 32], strides = [1, 1]} : vector<8x96xf32> to vector<8x32xf32>
    %139 = arith.truncf %136 : vector<8x32xf32> to vector<8x32xbf16>
    %140 = arith.truncf %137 : vector<8x32xf32> to vector<8x32xbf16>
    %141 = arith.truncf %138 : vector<8x32xf32> to vector<8x32xbf16>
    %cst_56 = arith.constant dense<0.000000e+00> : vector<8x8xf32>
    %142 = tpu.matmul %139, %140, %cst_56 {dimension_numbers = #tpu.dot_dimension_numbers<[1], [1], [0], [0], [0, 0, 1, 0], [], []>} : vector<8x32xbf16>, vector<8x32xbf16>, vector<8x8xf32> -> vector<8x8xf32>
    %143 = vector.broadcast %3 : vector<1x8xf32> to vector<8x8xf32>
    %144 = arith.addf %142, %143 : vector<8x8xf32>
    %cst_57 = arith.constant dense<0xFF800000> : vector<8xf32>
    %145 = vector.multi_reduction <maximumf>, %144, %cst_57 [1] : vector<8x8xf32> to vector<8xf32>
    %146 = vector.shape_cast %145 : vector<8xf32> to vector<8x1xf32>
    %147 = vector.broadcast %146 : vector<8x1xf32> to vector<8x8xf32>
    %148 = arith.subf %144, %147 : vector<8x8xf32>
    %149 = math.exp %148 : vector<8x8xf32>
    %cst_58 = arith.constant dense<0.000000e+00> : vector<8xf32>
    %150 = vector.multi_reduction <add>, %149, %cst_58 [1] : vector<8x8xf32> to vector<8xf32>
    %151 = vector.shape_cast %150 : vector<8xf32> to vector<8x1xf32>
    %152 = tpu.reciprocal %151 {approx = true} : vector<8x1xf32> -> vector<8x1xf32>
    %153 = vector.broadcast %152 : vector<8x1xf32> to vector<8x8xf32>
    %154 = arith.mulf %149, %153 : vector<8x8xf32>
    %155 = arith.truncf %154 : vector<8x8xf32> to vector<8x8xbf16>
    %cst_59 = arith.constant dense<0.000000e+00> : vector<8x32xf32>
    %156 = tpu.matmul %155, %141, %cst_59 {dimension_numbers = #tpu.dot_dimension_numbers<[1], [0], [0], [1], [0, 0, 1, 1], [], []>} : vector<8x8xbf16>, vector<8x32xbf16>, vector<8x32xf32> -> vector<8x32xf32>
    %c1_60 = arith.constant 1 : index
    %c0_61 = arith.constant 0 : index
    %c0_62 = arith.constant 0 : index
    %157 = vector.load %arg4[%c1_60, %c0_61, %c0_62] : memref<2x32x32xbf16, #tpu.memory_space<vmem>>, vector<1x32x32xbf16>
    %158 = vector.shape_cast %157 : vector<1x32x32xbf16> to vector<32x32xbf16>
    %159 = arith.truncf %156 : vector<8x32xf32> to vector<8x32xbf16>
    %cst_63 = arith.constant dense<0.000000e+00> : vector<8x32xf32>
    %160 = tpu.matmul %159, %158, %cst_63 {dimension_numbers = #tpu.dot_dimension_numbers<[1], [0], [0], [1], [0, 0, 1, 1], [], []>} : vector<8x32xbf16>, vector<32x32xbf16>, vector<8x32xf32> -> vector<8x32xf32>
    %161 = vector.broadcast %126 : vector<1x32xf32> to vector<8x32xf32>
    %162 = arith.addf %160, %161 : vector<8x32xf32>
    %163 = arith.addf %119, %162 : vector<8x32xf32>
    %cst_64 = arith.constant dense<0.000000e+00> : vector<8xf32>
    %164 = vector.multi_reduction <add>, %163, %cst_64 [1] : vector<8x32xf32> to vector<8xf32>
    %165 = vector.shape_cast %164 : vector<8xf32> to vector<8x1xf32>
    %cst_65 = arith.constant 3.200000e+01 : f32
    %166 = vector.broadcast %cst_65 : f32 to vector<8x1xf32>
    %167 = arith.divf %165, %166 : vector<8x1xf32>
    %168 = vector.broadcast %167 : vector<8x1xf32> to vector<8x32xf32>
    %169 = arith.subf %163, %168 : vector<8x32xf32>
    %170 = arith.mulf %169, %169 : vector<8x32xf32>
    %cst_66 = arith.constant dense<0.000000e+00> : vector<8xf32>
    %171 = vector.multi_reduction <add>, %170, %cst_66 [1] : vector<8x32xf32> to vector<8xf32>
    %172 = vector.shape_cast %171 : vector<8xf32> to vector<8x1xf32>
    %cst_67 = arith.constant 3.200000e+01 : f32
    %173 = vector.broadcast %cst_67 : f32 to vector<8x1xf32>
    %174 = arith.divf %172, %173 : vector<8x1xf32>
    %175 = vector.broadcast %167 : vector<8x1xf32> to vector<8x32xf32>
    %176 = arith.subf %163, %175 : vector<8x32xf32>
    %cst_68 = arith.constant 9.99999974E-6 : f32
    %177 = vector.broadcast %cst_68 : f32 to vector<8x1xf32>
    %178 = arith.addf %174, %177 : vector<8x1xf32>
    %179 = math.rsqrt %178 : vector<8x1xf32>
    %180 = vector.broadcast %179 : vector<8x1xf32> to vector<8x32xf32>
    %181 = arith.mulf %176, %180 : vector<8x32xf32>
    %182 = vector.broadcast %127 : vector<1x32xf32> to vector<8x32xf32>
    %183 = arith.mulf %181, %182 : vector<8x32xf32>
    %184 = vector.broadcast %128 : vector<1x32xf32> to vector<8x32xf32>
    %185 = arith.addf %183, %184 : vector<8x32xf32>
    %186 = arith.truncf %185 : vector<8x32xf32> to vector<8x32xbf16>
    %c1_69 = arith.constant 1 : index
    %c0_70 = arith.constant 0 : index
    %c0_71 = arith.constant 0 : index
    %187 = vector.load %arg5[%c1_69, %c0_70, %c0_71] : memref<2x32x64xbf16, #tpu.memory_space<vmem>>, vector<1x32x64xbf16>
    %188 = vector.shape_cast %187 : vector<1x32x64xbf16> to vector<32x64xbf16>
    %cst_72 = arith.constant dense<0.000000e+00> : vector<8x64xf32>
    %189 = tpu.matmul %186, %188, %cst_72 {dimension_numbers = #tpu.dot_dimension_numbers<[1], [0], [0], [1], [0, 0, 1, 1], [], []>} : vector<8x32xbf16>, vector<32x64xbf16>, vector<8x64xf32> -> vector<8x64xf32>
    %c1_73 = arith.constant 1 : index
    %c0_74 = arith.constant 0 : index
    %c0_75 = arith.constant 0 : index
    %190 = vector.load %arg9[%c1_73, %c0_74, %c0_75] : memref<2x1x64xf32, #tpu.memory_space<vmem>>, vector<1x1x64xf32>
    %191 = vector.shape_cast %190 : vector<1x1x64xf32> to vector<1x64xf32>
    %192 = vector.broadcast %191 : vector<1x64xf32> to vector<8x64xf32>
    %193 = arith.addf %189, %192 : vector<8x64xf32>
    %194 = arith.mulf %193, %193 : vector<8x64xf32>
    %195 = arith.mulf %193, %194 : vector<8x64xf32>
    %cst_76 = arith.constant 4.471500e-02 : f32
    %196 = vector.broadcast %cst_76 : f32 to vector<8x64xf32>
    %197 = arith.mulf %196, %195 : vector<8x64xf32>
    %198 = arith.addf %193, %197 : vector<8x64xf32>
    %cst_77 = arith.constant 0.797884583 : f32
    %199 = vector.broadcast %cst_77 : f32 to vector<8x64xf32>
    %200 = arith.mulf %199, %198 : vector<8x64xf32>
    %201 = math.tanh %200 : vector<8x64xf32>
    %cst_78 = arith.constant 1.000000e+00 : f32
    %202 = vector.broadcast %cst_78 : f32 to vector<8x64xf32>
    %203 = arith.addf %202, %201 : vector<8x64xf32>
    %cst_79 = arith.constant 5.000000e-01 : f32
    %204 = vector.broadcast %cst_79 : f32 to vector<8x64xf32>
    %205 = arith.mulf %204, %203 : vector<8x64xf32>
    %206 = arith.mulf %193, %205 : vector<8x64xf32>
    %c1_80 = arith.constant 1 : index
    %c0_81 = arith.constant 0 : index
    %c0_82 = arith.constant 0 : index
    %207 = vector.load %arg6[%c1_80, %c0_81, %c0_82] : memref<2x64x32xbf16, #tpu.memory_space<vmem>>, vector<1x64x32xbf16>
    %208 = vector.shape_cast %207 : vector<1x64x32xbf16> to vector<64x32xbf16>
    %209 = arith.truncf %206 : vector<8x64xf32> to vector<8x64xbf16>
    %cst_83 = arith.constant dense<0.000000e+00> : vector<8x32xf32>
    %210 = tpu.matmul %209, %208, %cst_83 {dimension_numbers = #tpu.dot_dimension_numbers<[1], [0], [0], [1], [0, 0, 1, 1], [], []>} : vector<8x64xbf16>, vector<64x32xbf16>, vector<8x32xf32> -> vector<8x32xf32>
    %211 = vector.broadcast %129 : vector<1x32xf32> to vector<8x32xf32>
    %212 = arith.addf %210, %211 : vector<8x32xf32>
    %213 = arith.addf %185, %212 : vector<8x32xf32>
    %cst_84 = arith.constant dense<0.000000e+00> : vector<8xf32>
    %214 = vector.multi_reduction <add>, %213, %cst_84 [1] : vector<8x32xf32> to vector<8xf32>
    %215 = vector.shape_cast %214 : vector<8xf32> to vector<8x1xf32>
    %cst_85 = arith.constant 3.200000e+01 : f32
    %216 = vector.broadcast %cst_85 : f32 to vector<8x1xf32>
    %217 = arith.divf %215, %216 : vector<8x1xf32>
    %218 = vector.broadcast %217 : vector<8x1xf32> to vector<8x32xf32>
    %219 = arith.subf %213, %218 : vector<8x32xf32>
    %220 = arith.mulf %219, %219 : vector<8x32xf32>
    %cst_86 = arith.constant dense<0.000000e+00> : vector<8xf32>
    %221 = vector.multi_reduction <add>, %220, %cst_86 [1] : vector<8x32xf32> to vector<8xf32>
    %222 = vector.shape_cast %221 : vector<8xf32> to vector<8x1xf32>
    %cst_87 = arith.constant 3.200000e+01 : f32
    %223 = vector.broadcast %cst_87 : f32 to vector<8x1xf32>
    %224 = arith.divf %222, %223 : vector<8x1xf32>
    %225 = vector.broadcast %217 : vector<8x1xf32> to vector<8x32xf32>
    %226 = arith.subf %213, %225 : vector<8x32xf32>
    %cst_88 = arith.constant 9.99999974E-6 : f32
    %227 = vector.broadcast %cst_88 : f32 to vector<8x1xf32>
    %228 = arith.addf %224, %227 : vector<8x1xf32>
    %229 = math.rsqrt %228 : vector<8x1xf32>
    %230 = vector.broadcast %229 : vector<8x1xf32> to vector<8x32xf32>
    %231 = arith.mulf %226, %230 : vector<8x32xf32>
    %232 = vector.broadcast %130 : vector<1x32xf32> to vector<8x32xf32>
    %233 = arith.mulf %231, %232 : vector<8x32xf32>
    %234 = vector.broadcast %131 : vector<1x32xf32> to vector<8x32xf32>
    %235 = arith.addf %233, %234 : vector<8x32xf32>
    %c0_89 = arith.constant 0 : index
    %c0_90 = arith.constant 0 : index
    %236 = vector.load %arg10[%c0_89, %c0_90] : memref<32x512xbf16, #tpu.memory_space<vmem>>, vector<32x512xbf16>
    %237 = arith.truncf %235 : vector<8x32xf32> to vector<8x32xbf16>
    %cst_91 = arith.constant dense<0.000000e+00> : vector<8x512xf32>
    %238 = tpu.matmul %237, %236, %cst_91 {dimension_numbers = #tpu.dot_dimension_numbers<[1], [0], [0], [1], [0, 0, 1, 1], [], []>} : vector<8x32xbf16>, vector<32x512xbf16>, vector<8x512xf32> -> vector<8x512xf32>
    %c0_92 = arith.constant 0 : index
    %c0_93 = arith.constant 0 : index
    %239 = vector.load %arg11[%c0_92, %c0_93] : memref<1x512xf32, #tpu.memory_space<vmem>>, vector<1x512xf32>
    %240 = vector.broadcast %239 : vector<1x512xf32> to vector<8x512xf32>
    %241 = arith.addf %238, %240 : vector<8x512xf32>
    %242 = tpu.iota {dimensions = array<i32: 1>} : vector<8x512xi32>
    %cst_94 = arith.constant dense<0xFF800000> : vector<8xf32>
    %243 = vector.multi_reduction <maximumf>, %241, %cst_94 [1] : vector<8x512xf32> to vector<8xf32>
    %244 = vector.shape_cast %243 : vector<8xf32> to vector<8x1xf32>
    %245 = vector.broadcast %244 : vector<8x1xf32> to vector<8x512xf32>
    %246 = arith.cmpf oeq, %241, %245 : vector<8x512xf32>
    %c512_i32 = arith.constant 512 : i32
    %247 = vector.broadcast %c512_i32 : i32 to vector<8x512xi32>
    %248 = arith.select %246, %242, %247 : vector<8x512xi1>, vector<8x512xi32>
    %cst_95 = arith.constant dense<2147483647> : vector<8xi32>
    %249 = vector.multi_reduction <minsi>, %248, %cst_95 [1] : vector<8x512xi32> to vector<8xi32>
    %250 = vector.shape_cast %249 : vector<8xi32> to vector<1x8xi32>
    %c0_96 = arith.constant 0 : index
    %c0_97 = arith.constant 0 : index
    %c0_98 = arith.constant 0 : index
    %251 = vector.load %arg12[%c0_96, %c0_97, %c0_98] : memref<1x1x8xi32, #tpu.memory_space<vmem>>, vector<1x1x8xi32>
    %252 = vector.shape_cast %251 : vector<1x1x8xi32> to vector<1x8xi32>
    %253 = vector.shape_cast %250 : vector<1x8xi32> to vector<1x1x8xi32>
    tpu.vector_store %arg12[%c0_96, %c0_97, %c0_98], %253 {strides = array<i32>} : memref<1x1x8xi32, #tpu.memory_space<vmem>>, vector<1x1x8xi32>,
    return
  }
  func.func @transform_0(%arg0: i32) -> (i32, i32, i32) {
    %c0_i32 = arith.constant 0 : i32
    %c0_i32_0 = arith.constant 0 : i32
    %c0_i32_1 = arith.constant 0 : i32
    return %arg0, %c0_i32, %c0_i32_0 : i32, i32, i32
  }
  func.func @transform_1(%arg0: i32) -> (i32, i32, i32) {
    %c0_i32 = arith.constant 0 : i32
    %c0_i32_0 = arith.constant 0 : i32
    %c0_i32_1 = arith.constant 0 : i32
    return %arg0, %c0_i32, %c0_i32_0 : i32, i32, i32
  }
  func.func @transform_2(%arg0: i32) -> (i32, i32, i32) {
    %c0_i32 = arith.constant 0 : i32
    %c0_i32_0 = arith.constant 0 : i32
    %c0_i32_1 = arith.constant 0 : i32
    %c0_i32_2 = arith.constant 0 : i32
    return %c0_i32, %c0_i32_0, %c0_i32_1 : i32, i32, i32
  }
  func.func @transform_3(%arg0: i32) -> (i32, i32, i32) {
    %c0_i32 = arith.constant 0 : i32
    %c0_i32_0 = arith.constant 0 : i32
    %c0_i32_1 = arith.constant 0 : i32
    %c0_i32_2 = arith.constant 0 : i32
    return %c0_i32, %c0_i32_0, %c0_i32_1 : i32, i32, i32
  }
  func.func @transform_4(%arg0: i32) -> (i32, i32, i32) {
    %c0_i32 = arith.constant 0 : i32
    %c0_i32_0 = arith.constant 0 : i32
    %c0_i32_1 = arith.constant 0 : i32
    %c0_i32_2 = arith.constant 0 : i32
    return %c0_i32, %c0_i32_0, %c0_i32_1 : i32, i32, i32
  }
  func.func @transform_5(%arg0: i32) -> (i32, i32, i32) {
    %c0_i32 = arith.constant 0 : i32
    %c0_i32_0 = arith.constant 0 : i32
    %c0_i32_1 = arith.constant 0 : i32
    %c0_i32_2 = arith.constant 0 : i32
    return %c0_i32, %c0_i32_0, %c0_i32_1 : i32, i32, i32
  }
  func.func @transform_6(%arg0: i32) -> (i32, i32, i32) {
    %c0_i32 = arith.constant 0 : i32
    %c0_i32_0 = arith.constant 0 : i32
    %c0_i32_1 = arith.constant 0 : i32
    %c0_i32_2 = arith.constant 0 : i32
    return %c0_i32, %c0_i32_0, %c0_i32_1 : i32, i32, i32
  }
  func.func @transform_7(%arg0: i32) -> (i32, i32, i32) {
    %c0_i32 = arith.constant 0 : i32
    %c0_i32_0 = arith.constant 0 : i32
    %c0_i32_1 = arith.constant 0 : i32
    %c0_i32_2 = arith.constant 0 : i32
    return %c0_i32, %c0_i32_0, %c0_i32_1 : i32, i32, i32
  }
  func.func @transform_8(%arg0: i32) -> (i32, i32, i32) {
    %c0_i32 = arith.constant 0 : i32
    %c0_i32_0 = arith.constant 0 : i32
    %c0_i32_1 = arith.constant 0 : i32
    %c0_i32_2 = arith.constant 0 : i32
    return %c0_i32, %c0_i32_0, %c0_i32_1 : i32, i32, i32
  }
  func.func @transform_9(%arg0: i32) -> (i32, i32) {
    %c0_i32 = arith.constant 0 : i32
    %c0_i32_0 = arith.constant 0 : i32
    %c0_i32_1 = arith.constant 0 : i32
    return %c0_i32, %c0_i32_0 : i32, i32
  }
  func.func @transform_10(%arg0: i32) -> (i32, i32) {
    %c0_i32 = arith.constant 0 : i32
    %c0_i32_0 = arith.constant 0 : i32
    %c0_i32_1 = arith.constant 0 : i32
    return %c0_i32, %c0_i32_0 : i32, i32
  }
  func.func @transform_11(%arg0: i32) -> (i32, i32, i32) {
    %c0_i32 = arith.constant 0 : i32
    %c0_i32_0 = arith.constant 0 : i32
    %c0_i32_1 = arith.constant 0 : i32
    return %arg0, %c0_i32, %c0_i32_0 : i32, i32, i32
  }
}

</mosaic_0001>

<bundles_post_ra>
// kernel: tpu_custom_call.1
= control target key start
LH: loop header
LB: loop body
LE: loop exit
PB: predicated region body
PF: predicated region fallthrough
CT: control target
= control target key end

     0   :  { %s2786_s0 = inlined_call_operand.hbm [shape: f32[2,8,32], index: 0, kind: input, shape index: {}]   ;;  %s2787_s1 = inlined_call_operand.vmem [shape: f32[2,1,8], index: 1, kind: input, shape index: {}]   ;;  %s2788_s2 = inlined_call_operand.vmem [shape: bf16[2,32,96], index: 2, kind: input, shape index: {}]   ;;  %s2789_s3 = inlined_call_operand.hbm [shape: bf16[2,32,32], index: 3, kind: input, shape index: {}]   ;;  %s2790_s4 = inlined_call_operand.hbm [shape: bf16[2,32,64], index: 4, kind: input, shape index: {}]   ;;  %s2791_s5 = inlined_call_operand.vmem [shape: bf16[2,64,32], index: 5, kind: input, shape index: {}]   ;;  %s2792_s6 = inlined_call_operand.hbm [shape: f32[2,1,96], index: 6, kind: input, shape index: {}]   ;;  %s2793_s7 = inlined_call_operand.vmem [shape: f32[2,6,32], index: 7, kind: input, shape index: {}]   ;;  %s2794_s8 = inlined_call_operand.vmem [shape: f32[2,1,64], index: 8, kind: input, shape index: {}]   ;;  %s2795_s9 = inlined_call_operand.vmem [shape: bf16[32,512], index: 9, kind: input, shape index: {}]   ;;  %s2796_s10 = inlined_call_operand.vmem [shape: f32[1,512], index: 10, kind: input, shape index: {}]   ;;  %s2797_s11 = inlined_call_operand.hbm [shape: s32[2,1,8], index: 11, kind: output, shape index: {}]  }
   0x1   :  { %2805 = sst [smem:[#allocation17_spill]] %s2795_s9 }
   0x2   :  { %2806 = sst [smem:[#allocation18_spill]] %s2796_s10 }
   0x3   :  { %2807 = sst [smem:[#allocation19_spill]] %s2797_s11 }
   0x4   :  { %16 = vsyncpa [#allocation3], 0 }
   0x5   :  { %18 = vsyncpa [#allocation3 + $0x1], 0 }
   0x6   :  { %19 = vsyncpa [#allocation6], 0 }
   0x7   :  { %20 = vsyncpa [#allocation9], 0 }
   0x8   :  { %21 = vsyncpa [#allocation4], 0 }
   0x9   :  { %23 = vsyncpa [#allocation4 + $0x1], 0  ;;  %s2300_s17 = smov 0   ;;  %s2302_s18 = smov 0  }
   0xa   :  { %s2304_s19 = smov 0   ;;  %s2306_s20 = smov 0  }
   0xb LB: > { %2808 = sst [smem:[#allocation15_spill]] %s2212_s17  ;;  %s2321_s21 = sadd.s32 4294967295, %s2224_s20   ;;  %s2224_s20 = sphi %s2306_s20, %s2835_s20   ;;  %s2220_s19 = sphi %s2304_s19, %s2834_s19   ;;  %s2216_s18 = sphi %s2302_s18, %s2833_s18   ;;  %s2212_s17 = sphi %s2300_s17, %s2832_s17  }
   0xc   : > { %s1689_s22 = sadd.s32 4294967294, %s2224_s20   ;;  %p49_p0 = scmp.ne.s32.totalorder %s2216_s18, %s2212_s17 }
   0xd   : > { %p2799_p1 = scmp.eq.s32.totalorder %s2321_s21, 0  ;;  %p294_p3 = scmp.eq.s32.totalorder %s1689_s22, 1 }
   0xe   : > { %p1690_p5 = scmp.ge.s32.totalorder %s2224_s20, 1  ;;  %p301_p7 = scmp.lt.s32.totalorder %s2224_s20, 3 }
   0xf   : > { %p2330_p4 = por %p2799_p1, %p49_p0  ;;  %p2335_p6 = por %p294_p3, %p49_p0 }
  0x10   : > { %p2340_p8 = pnand %p1690_p5, %p301_p7  ;;  %s2226_s26 = smov [#allocation5]  }
  0x11   : > { %s2809_s23 = scalar_select %p2330_p4, 1, 0 }
  0x12   : > { %s2810_s24 = scalar_select %p2335_p6, 1, 0 }
  0x13   : > { %s2812_s25 = scalar_select %p2340_p8, 1, 0 }
  0x14   : > { %2811 = sst [smem:[#allocation16_spill]] %s2810_s24  ;;  %s316_s27 = sshll.u32 %s2226_s26, 4  ;;  %s2344_s27 = int_to_ptr.vmem [resolvable:$true] %s316_s27 }
  0x15   : > { %p1914_p9 = pneg %p2340_p8  ;;  %s2227_s29 = smov [#allocation7]  }
  0x16   : > { %s329_s30 = sshll.u32 %s2227_s29, 4  ;;  %s2228_s12 = smov [#allocation8]   ;;  %s2355_s30 = int_to_ptr.vmem [resolvable:$true] %s329_s30 }
  0x17   : > { %p2351_p11 = pnand %p1914_p9, %p2799_p1  ;;  %s2357_s13 = sshll.u32 %s2228_s12, 4  ;;  %s346_s13 = int_to_ptr.vmem [resolvable:$true] %s2357_s13 }
  0x18   : > { %s2036_s16 = scalar_lea.hbm %s2789_s3, 512 }
  0x19   : > { %p2037_p12 = scmp.ne.s32.totalorder %s2789_s3, %s2036_s16  ;;  %p2367_p13 = pneg %p2351_p11 }
  0x1a   : > { %p2043_p5 = scmp.lt.u32.totalorder %s2036_s16, %s2789_s3 }
  0x1b   : > { %p2039_p0 = pnand %p2367_p13, %p2037_p12 }
  0x1d   : > { %p2040_p3 = pneg %p2039_p0 }
  0x1f   : > { %p2045_p7 = pnand %p2043_p5, %p2040_p3 }
  0x21   : > { %2048 = shalt.err (!%p2045_p7)
}
  0x22   : > { %s2049_s14 = scalar_lea.vmem %s2344_s27, 512  ;;  %p2057_p2 = scmp.lt.s32.totalorder %s2344_s27, %s2344_s27 }
  0x23   : > { %p2050_p9 = scmp.ne.s32.totalorder %s2344_s27, %s2049_s14  ;;  %p2058_p6 = scmp.lt.s32.totalorder %s2049_s14, %s2049_s14 }
  0x25   : > { %p2052_p10 = pnand %p2050_p9, %p2367_p13  ;;  %p2059_p12 = por %p2058_p6, %p2057_p2 }
  0x27   : > { %p2053_p1 = pneg %p2052_p10 }
  0x29   : > { %p2060_p0 = pnand %p2059_p12, %p2053_p1 }
  0x2b   : > { %2063 = shalt.err (!%p2060_p0)
}
  0x2c   : > { %s2229_s15 = smov 64   ;;  %s2230_s16 = smov 4  }
  0x2d   : > { %1917 = dma.hbm_to_vmem [thread:$0]  (!%p2351_p11), %s2789_s3, 512, %s2344_s27, [#allocation6], %s2229_s15, %s2229_s15, %s2230_s16  }
  0x2e   : > { %s2064_s17 = scalar_lea.hbm %s2790_s4, 512 }
  0x2f   : > { %p2065_p2 = scmp.ne.s32.totalorder %s2790_s4, %s2064_s17  ;;  %p2071_p10 = scmp.lt.u32.totalorder %s2064_s17, %s2790_s4 }
  0x31   : > { %p2067_p1 = pnand %p2065_p2, %p2367_p13 }
  0x33   : > { %p2068_p6 = pneg %p2067_p1 }
  0x35   : > { %p2073_p3 = pnand %p2071_p10, %p2068_p6 }
  0x37   : > { %2076 = shalt.err (!%p2073_p3)
}
  0x38   : > { %s2077_s27 = scalar_lea.vmem %s2355_s30, 512  ;;  %p2085_p12 = scmp.lt.s32.totalorder %s2355_s30, %s2355_s30 }
  0x39   : > { %p2078_p5 = scmp.ne.s32.totalorder %s2355_s30, %s2077_s27  ;;  %p2086_p0 = scmp.lt.s32.totalorder %s2077_s27, %s2077_s27 }
  0x3b   : > { %p2080_p7 = pnand %p2078_p5, %p2367_p13  ;;  %p2087_p2 = por %p2086_p0, %p2085_p12 }
  0x3d   : > { %p2081_p9 = pneg %p2080_p7 }
  0x3f   : > { %p2088_p1 = pnand %p2087_p2, %p2081_p9 }
  0x41   : > { %2091 = shalt.err (!%p2088_p1)
}
  0x42   : > { %1920 = dma.hbm_to_vmem [thread:$0]  (!%p2351_p11), %s2790_s4, 512, %s2355_s30, [#allocation6], %s2229_s15, %s2229_s15, %s2230_s16  }
  0x43   : > { %s2092_s22 = scalar_lea.hbm %s2792_s6, 32 }
  0x44   : > { %p2093_p6 = scmp.ne.s32.totalorder %s2792_s6, %s2092_s22  ;;  %p2099_p5 = scmp.lt.u32.totalorder %s2092_s22, %s2792_s6 }
  0x46   : > { %p2095_p10 = pnand %p2093_p6, %p2367_p13 }
  0x48   : > { %p2096_p3 = pneg %p2095_p10 }
  0x4a   : > { %p2101_p7 = pnand %p2099_p5, %p2096_p3 }
  0x4c   : > { %2104 = shalt.err (!%p2101_p7)
}
  0x4d   : > { %s2105_s27 = scalar_lea.vmem %s346_s13, 32  ;;  %p2113_p2 = scmp.lt.s32.totalorder %s346_s13, %s346_s13 }
  0x4e   : > { %p2106_p9 = scmp.ne.s32.totalorder %s346_s13, %s2105_s27  ;;  %p2114_p1 = scmp.lt.s32.totalorder %s2105_s27, %s2105_s27 }
  0x50   : > { %p2108_p12 = pnand %p2106_p9, %p2367_p13  ;;  %p2115_p4 = por %p2114_p1, %p2113_p2 }
  0x52   : > { %p2109_p0 = pneg %p2108_p12 }
  0x54   : > { %p2116_p8 = pnand %p2115_p4, %p2109_p0 }
  0x56   : > { %2119 = shalt.err (!%p2116_p8)
}
  0x57   : > { %s2231_s30 = smov 16   ;;  %s2232_s24 = smov 1  }
  0x58   : > { %1923 = dma.hbm_to_vmem [thread:$0]  (!%p2351_p11), %s2792_s6, 32, %s346_s13, [#allocation9], %s2231_s30, %s2231_s30, %s2232_s24  }
  0x59   : > { %s2431_s9 = sadd.s32 1, %s2224_s20   ;;  %s36_s11 = sadd.s32 1, %s2220_s19 }
  0x5a   : > { %s33_s10 = ssub.s32 %s2224_s20, %s2431_s9  ;;  %p43_p8 = scmp.ne.s32.totalorder %s2220_s19, %s2216_s18 }
  0x5b   : > { %p34_p4 = scmp.eq.s32.totalorder %s33_s10, 0  ;;  %p44_p13 = scmp.eq.s32.totalorder %s2224_s20, 0 }
  0x5c   : > { %p1935_p6 = scmp.lt.s32.totalorder %s2224_s20, 2  ;;  %p2815_p3 = scmp.eq.s32.totalorder %s2321_s21, 1 }
  0x5d   : > { %s2441_s17 = scalar_select %p34_p4, %s2220_s19, %s36_s11  }
  0x5e   : > { %p45_p10 = por %p44_p13, %p43_p8  ;;  %p2445_p5 = por %p2815_p3, %p43_p8 }
  0x5f   : > { %s371_s28 = sand.u32 1, %s2220_s19   ;;  %s1696_s26 = sshll.u32 %s2224_s20, 7 }
  0x60   : > { %s1695_s13 = sshll.u32 %s371_s28, 3  ;;  %s2454_s14 = scalar_lea.hbm %s2786_s0, %s1696_s26 }
  0x61   : > { %s375_s27 = scalar_lea.vmem [#allocation2], %s1695_s13  ;;  %p2456_p11 = pnand %p1935_p6, %p45_p10 }
  0x62   : > { %s382_s30 = sshll.u32 %s375_s27, 4  ;;  %s372_s15 = scalar_lea.sflag [#allocation3], %s371_s28  ;;  %s2460_s30 = int_to_ptr.vmem [resolvable:$true] %s382_s30 }
  0x63   : > { %s2120_s16 = scalar_lea.hbm %s2454_s14, 128  ;;  %p2122_p9 = pneg %p2456_p11 }
  0x64   : > { %p2121_p7 = scmp.ne.s32.totalorder %s2454_s14, %s2120_s16  ;;  %s2125_s26 = scalar_lea.hbm %s2786_s0, 256 }
  0x65   : > { %p2126_p2 = scmp.lt.u32.totalorder %s2454_s14, %s2786_s0  ;;  %p2127_p1 = scmp.lt.u32.totalorder %s2125_s26, %s2120_s16 }
  0x66   : > { %p2123_p12 = pnand %p2122_p9, %p2121_p7  ;;  %p2129_p8 = scmp.lt.u32.totalorder %s2120_s16, %s2454_s14 }
  0x67   : > { %p2128_p4 = por %p2127_p1, %p2126_p2 }
  0x68   : > { %p2124_p0 = pneg %p2123_p12 }
  0x69   : > { %p2130_p13 = por %p2129_p8, %p2128_p4 }
  0x6b   : > { %p2131_p6 = pnand %p2130_p13, %p2124_p0 }
  0x6d   : > { %2134 = shalt.err (!%p2131_p6)
}
  0x6e   : > { %s2135_s28 = scalar_lea.vmem %s2460_s30, 128  ;;  %s2233_s12 = smov [#allocation2]  }
  0x6f   : > { %p2136_p10 = scmp.ne.s32.totalorder %s2460_s30, %s2135_s28  ;;  %s2140_s27 = sshll.u32 %s2233_s12, 4  ;;  %s2141_s27 = int_to_ptr.vmem [resolvable:$false] %s2140_s27 }
  0x70   : > { %s2142_s10 = scalar_lea.vmem %s2141_s27, 256  ;;  %p2143_p12 = scmp.lt.s32.totalorder %s2460_s30, %s2141_s27 }
  0x71   : > { %p2138_p3 = pnand %p2136_p10, %p2122_p9  ;;  %p2144_p2 = scmp.lt.s32.totalorder %s2142_s10, %s2135_s28 }
  0x73   : > { %p2139_p7 = pneg %p2138_p3  ;;  %p2145_p1 = por %p2144_p2, %p2143_p12 }
  0x75   : > { %p2146_p4 = pnand %p2145_p1, %p2139_p7 }
  0x77   : > { %2149 = shalt.err (!%p2146_p4)
}
  0x78   : > { %1927 = dma.hbm_to_vmem [thread:$0]  (!%p2456_p11), %s2454_s14, 128, %s2460_s30, %s372_s15  }
  0x79   : > { %p2818_p0 = scmp.ne.s32.totalorder %s2812_s25, 0 }
  0x7a   : > { %s2490_s16 = sand.u32 (!%p2818_p0), 1, %s2216_s18   ;;  %p2819_p9 = scmp.ne.s32.totalorder (!%p2818_p0), %s2809_s23, 0 }
  0x7b   : > { %397 = sbr.rel (%p2818_p0) target bundleno = 5608 (0x15e8), region = 64  ;;  %s1698_s11 = sshll.u32 (!%p2818_p0), %s2490_s16, 3 }
  0x7c   : > { %s400_s26 = scalar_lea.sflag (!%p2818_p0), [#allocation3], %s2490_s16  ;;  %s403_s13 = scalar_lea.vmem (!%p2818_p0), [#allocation2], %s1698_s11 }
  0x82   : > { %2195 = dma.done.wait (%p2819_p9), %s400_s26, 128  }
  0x83   : > { %2197 = vsyncadd (%p2819_p9), %s400_s26, 4294967168  ;;  %p2820_p8 = scmp.eq.s32.totalorder %s2321_s21, 0 }
  0x85   : > { %2199 = dma.done.wait (%p2820_p8), [#allocation6], 1024   ;;  %p2821_p11 = pmov %p2820_p8 }
  0x86   : > { %p2822_p13 = pmov %p2820_p8 }
  0x87   : > { %2201 = vsyncadd (%p2821_p11), [#allocation6], 4294966272 }
  0x88   : > { %2203 = dma.done.wait (%p2822_p13), [#allocation9], 32   ;;  %p2823_p6 = pmov %p2820_p8 }
  0x89   : > { %v2234_v0 = vmov 0.0   ;;  %vm2235_vm0 = vmmov 0   ;;  %v1984_v1 = vld [vmem:[%s2788_s2] sm:$0xff]   ;;  %v1985_v2 = vld [vmem:[%s2788_s2 + $0x8] sm:$0xff]   ;;  %vm487_vm1 = vcmask 261120   ;;  %s2236_s24 = smov 96   ;;  %v654_v39 = vlaneseq }
  0x8a   : > { %2205 = vsyncadd (%p2823_p6), [#allocation9], 4294967264  ;;  %1802 = vmatprep.subr.bf16.mxu0 %v2234_v0  ;;  %1806 = vmatprep.mubr.msk.bf16.mxu0 %vm2235_vm0, %v2234_v0  ;;  %v2518_v3 = vld [vmem:[%s403_s13] sm:$0xff]  ;;  %v1702_v5 = vld [vmem:[#allocation8] ss:$0 sm:$0xff]  ;;  %p456_p10 = scmp.lt.s32.totalorder %s2321_s21, 1 }
  0x8b   : > { %1810 = vmatprep.subr.bf16.mxu1 %v2234_v0  ;;  %1812 = vmatprep.mubr.msk.bf16.mxu1 %vm2235_vm0, %v2234_v0  ;;  %v468_v4 = vpack.c.bf16 %v2518_v3, %v2518_v3  ;;  %vm587_vm2 = vcmask 64512   ;;  %s2237_s27 = smov 64   ;;  %v1986_v26 = vld [vmem:[#allocation5] sm:$0xff]   ;;  %vm605_vm3 = vcmask 1043456   ;;  %v1987_v33 = vld [vmem:[#allocation5 + $0x8] sm:$0xff]   ;;  %v2555_v40 = vshrl.u32 %v654_v39, 7 }
  0x8c   : > { %1803 = vmatpush3.bf16.msra.mxu0 %v1984_v1  ;;  %s457_s15 = scalar_select %p456_p10, %s2321_s21, 1  ;;  %v2563_v42 = vld [vmem:[%s2793_s7] sm:$0x3f]  ;;  %v1988_v56 = vld [vmem:[#allocation7] sm:$0xff]   ;;  %v1989_v57 = vld [vmem:[#allocation7 + $0x8] sm:$0xff]   ;;  %vm851_vm4 = vcmask 523264  }
  0x8d   : > { %1804 = vmatprep.subr.bf16.mxu0 %v2234_v0  ;;  %v2558_v41 = vsub.s32 0, %v2555_v40  ;;  %v2573_v61 = vsub.s32 1, %v2555_v40  ;;  %v2576_v62 = vsub.s32 2, %v2555_v40  ;;  %s2825_s14 = sld [smem:[#allocation18_spill]]  ;;  %s1763_s30 = sshll.u32 %s2321_s21, 4  ;;  %vm1570_vm13 = vcmask 57344  }
  0x8e   : > { %s458_s12 = scalar_lea.vmem %s2787_s1, %s457_s15  ;;  %s455_s15 = scalar_lea.vmem [#allocation10], %s2490_s16 }
  0x8f   : > { %v2538_v14 = vld [vmem:[%s458_s12] ss:$0 sm:$0xff]  ;;  %v657_v43 = vrot.slane %v2563_v42, %v2558_v41  ;;  %v731_v63 = vrot.slane %v2563_v42, %v2573_v61  ;;  %s1585_s29 = sshll.u32 %s455_s15, 4  ;;  %s2826_s10 = sld [smem:[#allocation19_spill]]  ;;  %s2744_s29 = int_to_ptr.vmem [resolvable:$true] %s1585_s29 }
  0x90   : > { %1805 = vmatpush3.bf16.msra.mxu0 %v1985_v2  ;;  %s1573_s26 = scalar_lea.sflag [#allocation4], %s2490_s16  ;;  %s2150_s13 = scalar_lea.vmem %s2744_s29, 16 }
  0x91   : > { %1816 = vmatprep.subr.bf16.mxu0 %v2234_v0  ;;  %p2151_p3 = scmp.ne.s32.totalorder %s2744_s29, %s2150_s13  ;;  %s2239_s21 = smov [#allocation10]  }
  0x93   : > { %1807 = vmatmul.mubr.msk.bf16.vlgmr.msra.gmra.mrb[0].mxu0 %vm487_vm1, %v468_v4  ;;  %p2152_p7 = pnand %p2151_p3, %p2445_p5 }
  0x94   : > { %1818 = vmatprep.mubr.msk.bf16.mxu0 %vm2235_vm0, %v2234_v0 }
  0x95   : > { %s2742_s11 = scalar_lea.hbm %s2826_s10, %s1763_s30  ;;  %p2153_p12 = pneg %p2152_p7 }
 0x166   : > { %v525_v6 = vpop.f32.mrb[0].mxu0 }
 0x167   : > { %v526_v7 = vadd.f32 %v1702_v5, %v525_v6  ;;  %v1808_v8 = vpop.f32.mrb[1].mxu0 }
 0x168   : > { %v528_v9 = vpop.f32.mrb[2].mxu0  ;;  %v1991_v8 = vld [vmem:[%s2791_s5 + $0x8] sm:$0xff]  }
 0x169   : > { %v531_v10 = vpack.c.bf16 %v526_v7, %v526_v7  ;;  %v1809_v11 = vpop.f32.mrb[3].mxu0  ;;  %v1990_v7 = vld [vmem:[%s2791_s5] sm:$0xff]   ;;  %v1992_v9 = vld [vmem:[%s2791_s5 + $0x10] sm:$0xff]  }
 0x16a   : > { %v1712_v11 = vld [vmem:[%s2794_s8] ss:$0 sm:$0xff] }
 0x16b   : > { %539 = vrot.lane.b32.xlu0 %v531_v10, %s2236_s24 }
 0x1dd   : > { %v540_v12 = vpop.permute.xlu0 %539 }
 0x1de   : > { %v545_v13 = vsel %vm487_vm1, %v540_v12, 0 }
 0x1df   : > { %1811 = vmatpush3.bf16.xpose.msra.mxu1 %v545_v13 }
 0x1e0   : > { %1822 = vmatprep.subr.bf16.mxu1 %v2234_v0 }
 0x1e6   : > { %1813 = vmatmul.mubr.msk.bf16.vlgmr.msra.gmra.mrb[0].mxu1 %vm487_vm1, %v531_v10 }
 0x1e7   : > { %1826 = vmatprep.mubr.msk.bf16.mxu1 %vm2235_vm0, %v2234_v0  ;;  %1823 = vmatpush3.bf16.msra.mxu1 %v1986_v26 }
 0x1e8   : > { %1824 = vmatprep.subr.bf16.mxu1 %v2234_v0 }
 0x1eb   : > { %1825 = vmatpush3.bf16.msra.mxu1 %v1987_v33 }
 0x1ec   : > { %1838 = vmatprep.subr.bf16.mxu1 %v2234_v0 }
 0x2b9   : > { %v581_v15 = vpop.f32.mrb[0].mxu1 }
 0x2ba   : > { %v582_v16 = vadd.f32 %v2538_v14, %v581_v15  ;;  %v1814_v17 = vpop.f32.mrb[1].mxu1 }
 0x2bb   : > { %v584_v18 = vpop.f32.mrb[2].mxu1 }
 0x2bc   : > { %v1815_v19 = vpop.f32.mrb[3].mxu1  ;;  %v588_v20 = vsel %vm587_vm2, %v582_v16, -inf }
 0x2bd   : > { %589 = vmax.xlane.f32.xlu0 %v588_v20 }
 0x34a   : > { %v590_v21 = vpop.xlane.xlu0 %589 }
 0x34b   : > { %v591_v22 = vsub.f32 %v582_v16, %v590_v21 }
 0x34d   : > { %v592_v23 = vmul.f32 1.442695, %v591_v22 }
 0x34f   : > { %2016 = vpow2.f32 %v592_v23 }
 0x359   : > { %v2017_v24 = vpop.eup %2016 }
 0x35a   : > { %v594_v25 = vsel %vm587_vm2, %v2017_v24, 0.0 }
 0x35b   : > { %595 = vadd.xlane.f32.xlu1 %v594_v25 }
 0x36c   : > { %600 = vrot.lane.b32.xlu1 %v531_v10, %s2237_s27  ;;  %v1993_v10 = vld [vmem:[%s2791_s5 + $0x18] sm:$0xff]  }
 0x3e8   : > { %v596_v27 = vpop.xlane.xlu1 %595 }
 0x3e9   : > { %2018 = vrcp.f32 %v596_v27 }
 0x3ec   : > { %v601_v28 = vpop.permute.xlu1 %600 }
 0x3ed   : > { %v607_v29 = vsel %vm605_vm3, %v601_v28, 0  ;;  %v2608_v28 = vsub.s32 3, %v2555_v40 }
 0x3ee   : > { %1817 = vmatpush3.bf16.msra.mxu0 %v607_v29 }
 0x3ef   : > { %1830 = vmatprep.subr.bf16.mxu0 %v2234_v0  ;;  %v826_v29 = vrot.slane %v2563_v42, %v2608_v28 }
 0x3f3   : > { %v2019_v30 = vpop.eup %2018 }
 0x3f4   : > { %v598_v31 = vmul.f32 %v2019_v30, %v2017_v24 }
 0x3f6   : > { %v599_v32 = vpack.c.bf16 %v598_v31, %v598_v31 }
 0x3f8   : > { %1819 = vmatmul.mubr.msk.bf16.vlgmr.msra.gmra.mrb[4].mxu0 %vm587_vm2, %v599_v32 }
 0x3f9   : > { %1834 = vmatprep.mubr.msk.bf16.mxu0 %vm2235_vm0, %v2234_v0  ;;  %1831 = vmatpush3.bf16.msra.mxu0 %v1988_v56 }
 0x3fa   : > { %1832 = vmatprep.subr.bf16.mxu0 %v2234_v0 }
 0x3fd   : > { %1833 = vmatpush3.bf16.msra.mxu0 %v1989_v57 }
 0x3fe   : > { %1850 = vmatprep.subr.bf16.mxu0 %v2234_v0 }
 0x4cb   : > { %v643_v34 = vpop.f32.mrb[4].mxu0 }
 0x4cc   : > { %v653_v35 = vpack.c.bf16 %v643_v34, %v643_v34  ;;  %v1820_v36 = vpop.f32.mrb[5].mxu0 }
 0x4cd   : > { %v646_v37 = vpop.f32.mrb[6].mxu0 }
 0x4ce   : > { %v1821_v38 = vpop.f32.mrb[7].mxu0  ;;  %1827 = vmatmul.mubr.msk.bf16.vlgmr.msra.gmra.mrb[4].mxu1 %vm487_vm1, %v653_v35 }
 0x4cf   : > { %1846 = vmatprep.mubr.msk.bf16.mxu1 %vm2235_vm0, %v2234_v0  ;;  %1839 = vmatpush3.bf16.msra.mxu1 %v1990_v7 }
 0x4d0   : > { %1840 = vmatprep.subr.bf16.mxu1 %v2234_v0 }
 0x4d3   : > { %1841 = vmatpush3.bf16.msra.mxu1 %v1991_v8 }
 0x4d4   : > { %1842 = vmatprep.subr.bf16.mxu1 %v2234_v0 }
 0x4d7   : > { %1843 = vmatpush3.bf16.msra.mxu1 %v1992_v9 }
 0x4d8   : > { %1844 = vmatprep.subr.bf16.mxu1 %v2234_v0 }
 0x4db   : > { %1845 = vmatpush3.bf16.msra.mxu1 %v1993_v10 }
 0x4dc   : > { %1864 = vmatprep.subr.bf16.mxu1 %v2234_v0 }
 0x5a1   : > { %v707_v44 = vpop.f32.mrb[4].mxu1 }
 0x5a2   : > { %v708_v45 = vadd.f32 %v707_v44, %v657_v43  ;;  %v1828_v46 = vpop.f32.mrb[5].mxu1 }
 0x5a3   : > { %v710_v47 = vpop.f32.mrb[6].mxu1  ;;  %v1994_v46 = vld [vmem:[%s2788_s2 + $0x10] sm:$0xff]  }
 0x5a4   : > { %v1829_v48 = vpop.f32.mrb[7].mxu1  ;;  %v713_v49 = vadd.f32 %v708_v45, %v2518_v3  ;;  %v736_v3 = vrot.slane %v2563_v42, %v2576_v62  ;;  %v1995_v47 = vld [vmem:[%s2788_s2 + $0x18] sm:$0xff]  }
 0x5a6   : > { %v714_v50 = vsel %vm487_vm1, %v713_v49, 0.0 }
 0x5a7   : > { %715 = vadd.xlane.f32.xlu1 %v714_v50 }
 0x634   : > { %v716_v51 = vpop.xlane.xlu1 %715 }
 0x635   : > { %v718_v52 = vmul.f32 0.03125, %v716_v51  ;;  %v911_v51 = vsub.s32 4, %v2555_v40 }
 0x637   : > { %v719_v53 = vsub.f32 %v713_v49, %v718_v52  ;;  %v916_v52 = vsub.s32 5, %v2555_v40 }
 0x639   : > { %v720_v54 = vmul.f32 %v719_v53, %v719_v53  ;;  %v917_v56 = vrot.slane %v2563_v42, %v916_v52 }
 0x63b   : > { %v721_v55 = vsel %vm487_vm1, %v720_v54, 0.0 }
 0x63c   : > { %722 = vadd.xlane.f32.xlu0 %v721_v55 }
 0x6c9   : > { %v723_v58 = vpop.xlane.xlu0 %722 }
 0x6ca   : > { %v724_v59 = vmul.f32 0.03125, %v723_v58 }
 0x6cc   : > { %v725_v60 = vadd.f32 1e-05, %v724_v59 }
 0x6ce   : > { %2020 = vrsqrt.f32 %v725_v60  ;;  %v1726_v60 = vld [vmem:[#allocation8 + $0x1] ss:$0 sm:$0xff] }
 0x6d8   : > { %v2021_v1 = vpop.eup %2020 }
 0x6d9   : > { %v727_v2 = vmul.f32 %v2021_v1, %v719_v53  ;;  %v912_v53 = vrot.slane %v2563_v42, %v911_v51 }
 0x6db   : > { %v732_v4 = vmul.f32 %v731_v63, %v727_v2 }
 0x6dd   : > { %v737_v5 = vadd.f32 %v736_v3, %v732_v4 }
 0x6df   : > { %v738_v6 = vpack.c.bf16 %v737_v5, %v737_v5 }
 0x6e1   : > { %1835 = vmatmul.mubr.msk.bf16.vlgmr.msra.gmra.mrb[8].mxu0 %vm487_vm1, %v738_v6 }
 0x6e2   : > { %1854 = vmatprep.mubr.msk.bf16.mxu0 %vm2235_vm0, %v2234_v0  ;;  %1851 = vmatpush3.bf16.msra.mxu0 %v1994_v46 }
 0x6e3   : > { %1852 = vmatprep.subr.bf16.mxu0 %v2234_v0 }
 0x6e6   : > { %1853 = vmatpush3.bf16.msra.mxu0 %v1995_v47 }
 0x6e7   : > { %1858 = vmatprep.subr.bf16.mxu0 %v2234_v0 }
 0x7b4   : > { %v799_v12 = vpop.f32.mrb[8].mxu0 }
 0x7b5   : > { %v800_v13 = vadd.f32 %v1712_v11, %v799_v12  ;;  %v1836_v15 = vpop.f32.mrb[9].mxu0 }
 0x7b6   : > { %v802_v16 = vpop.f32.mrb[10].mxu0 }
 0x7b7   : > { %v805_v17 = vmul.f32 %v800_v13, %v800_v13  ;;  %v1837_v18 = vpop.f32.mrb[11].mxu0 }
 0x7b9   : > { %v806_v19 = vmul.f32 %v805_v17, %v800_v13 }
 0x7bb   : > { %v807_v20 = vmul.f32 0.044715, %v806_v19  ;;  %v1996_v19 = vld [vmem:[#allocation5 + $0x10] sm:$0xff]  }
 0x7bd   : > { %v808_v21 = vadd.f32 %v807_v20, %v800_v13 }
 0x7bf   : > { %v809_v22 = vmul.f32 0.7978846, %v808_v21 }
 0x7c1   : > { %2022 = vtanh.f32 %v809_v22 }
 0x7cb   : > { %v2023_v23 = vpop.eup %2022 }
 0x7cc   : > { %v811_v24 = vadd.f32 1.0, %v2023_v23 }
 0x7ce   : > { %v812_v25 = vmul.f32 0.5, %v811_v24 }
 0x7d0   : > { %v813_v26 = vmul.f32 %v812_v25, %v800_v13  ;;  %v1997_v25 = vld [vmem:[#allocation5 + $0x18] sm:$0xff]  }
 0x7d2   : > { %v822_v27 = vpack.c.bf16 %v813_v26, %v813_v26 }
 0x7d4   : > { %1847 = vmatmul.mubr.msk.bf16.vlgmr.msra.gmra.mrb[8].mxu1 %vm851_vm4, %v822_v27 }
 0x7d5   : > { %1866 = vmatprep.mubr.msk.bf16.mxu1 %vm2235_vm0, %v2234_v0 }
 0x8a7   : > { %v889_v30 = vpop.f32.mrb[8].mxu1 }
 0x8a8   : > { %v890_v31 = vadd.f32 %v889_v30, %v826_v29  ;;  %v1848_v32 = vpop.f32.mrb[9].mxu1 }
 0x8a9   : > { %v892_v33 = vpop.f32.mrb[10].mxu1  ;;  %v2660_v32 = vld [vmem:[%s2793_s7 + $0x8] sm:$0x3f] }
 0x8aa   : > { %v1849_v34 = vpop.f32.mrb[11].mxu1  ;;  %v895_v35 = vadd.f32 %v890_v31, %v737_v5  ;;  %v1109_v33 = vrot.slane %v2660_v32, %v2558_v41 }
 0x8ac   : > { %v896_v36 = vsel %vm487_vm1, %v895_v35, 0.0 }
 0x8ad   : > { %897 = vadd.xlane.f32.xlu0 %v896_v36 }
 0x93a   : > { %v898_v37 = vpop.xlane.xlu0 %897 }
 0x93b   : > { %v899_v38 = vmul.f32 0.03125, %v898_v37 }
 0x93d   : > { %v900_v43 = vsub.f32 %v895_v35, %v899_v38 }
 0x93f   : > { %v901_v44 = vmul.f32 %v900_v43, %v900_v43 }
 0x941   : > { %v902_v45 = vsel %vm487_vm1, %v901_v44, 0.0 }
 0x942   : > { %903 = vadd.xlane.f32.xlu0 %v902_v45 }
 0x9cf   : > { %v904_v48 = vpop.xlane.xlu0 %903 }
 0x9d0   : > { %v905_v49 = vmul.f32 0.03125, %v904_v48 }
 0x9d2   : > { %v906_v50 = vadd.f32 1e-05, %v905_v49 }
 0x9d4   : > { %2024 = vrsqrt.f32 %v906_v50  ;;  %v1998_v50 = vld [vmem:[#allocation7 + $0x10] sm:$0xff]  }
 0x9de   : > { %v2025_v54 = vpop.eup %2024 }
 0x9df   : > { %v908_v55 = vmul.f32 %v2025_v54, %v900_v43 }
 0x9e1   : > { %v913_v57 = vmul.f32 %v912_v53, %v908_v55  ;;  %v1999_v53 = vld [vmem:[#allocation7 + $0x18] sm:$0xff]  }
 0x9e3   : > { %v2630_v58 = vadd.f32 %v917_v56, %v913_v57  ;;  %v1182_v57 = vrot.slane %v2660_v32, %v2573_v61 }
 0x9e5   : > { %v928_v59 = vpack.c.bf16 %v2630_v58, %v2630_v58 }
 0x9e7   : > { %1855 = vmatmul.mubr.msk.bf16.vlgmr.msra.gmra.mrb[12].mxu0 %vm487_vm1, %v928_v59 }
 0x9e8   : > { %1860 = vmatprep.mubr.msk.bf16.mxu0 %vm2235_vm0, %v2234_v0 }
 0xaba   : > { %v984_v63 = vpop.f32.mrb[12].mxu0 }
 0xabb   : > { %v985_v1 = vadd.f32 %v1726_v60, %v984_v63  ;;  %v1856_v2 = vpop.f32.mrb[13].mxu0  ;;  %v1187_v60 = vrot.slane %v2660_v32, %v2576_v62 }
 0xabc   : > { %v987_v3 = vpop.f32.mrb[14].mxu0 }
 0xabd   : > { %v990_v4 = vpack.c.bf16 %v985_v1, %v985_v1  ;;  %v1857_v5 = vpop.f32.mrb[15].mxu0  ;;  %v2000_v3 = vld [vmem:[%s2791_s5 + $0x20] sm:$0xff]  }
 0xabe   : > { %v2002_v5 = vld [vmem:[%s2791_s5 + $0x30] sm:$0xff]  }
 0xabf   : > { %992 = vrot.lane.b32.xlu0 %v990_v4, %s2236_s24  ;;  %s2824_s24 = sld [smem:[#allocation17_spill]] }
 0xb31   : > { %v993_v42 = vpop.permute.xlu0 %992 }
 0xb32   : > { %v998_v6 = vsel %vm487_vm1, %v993_v42, 0  ;;  %v2003_v42 = vld [vmem:[%s2791_s5 + $0x38] sm:$0xff]  }
 0xb33   : > { %1859 = vmatpush3.bf16.xpose.msra.mxu0 %v998_v6  ;;  %v1736_v6 = vld [vmem:[%s2794_s8 + $0x1] ss:$0 sm:$0xff] }
 0xb34   : > { %1870 = vmatprep.subr.bf16.mxu0 %v2234_v0 }
 0xb3a   : > { %1861 = vmatmul.mubr.msk.bf16.vlgmr.msra.gmra.mrb[16].mxu0 %vm487_vm1, %v990_v4 }
 0xb3b   : > { %1874 = vmatprep.mubr.msk.bf16.mxu0 %vm2235_vm0, %v2234_v0  ;;  %1871 = vmatpush3.bf16.msra.mxu0 %v1996_v19 }
 0xb3c   : > { %1872 = vmatprep.subr.bf16.mxu0 %v2234_v0 }
 0xb3f   : > { %1873 = vmatpush3.bf16.msra.mxu0 %v1997_v25 }
 0xb40   : > { %1886 = vmatprep.subr.bf16.mxu0 %v2234_v0 }
 0xc0d   : > { %v1034_v7 = vpop.f32.mrb[16].mxu0 }
 0xc0e   : > { %v1035_v8 = vadd.f32 %v2538_v14, %v1034_v7  ;;  %v1862_v9 = vpop.f32.mrb[17].mxu0 }
 0xc0f   : > { %v1037_v10 = vpop.f32.mrb[18].mxu0 }
 0xc10   : > { %v1863_v11 = vpop.f32.mrb[19].mxu0  ;;  %v1040_v12 = vsel %vm587_vm2, %v1035_v8, -inf }
 0xc11   : > { %1041 = vmax.xlane.f32.xlu1 %v1040_v12 }
 0xc9e   : > { %v1042_v13 = vpop.xlane.xlu1 %1041 }
 0xc9f   : > { %v1043_v15 = vsub.f32 %v1035_v8, %v1042_v13 }
 0xca1   : > { %v1044_v16 = vmul.f32 1.442695, %v1043_v15 }
 0xca3   : > { %2026 = vpow2.f32 %v1044_v16 }
 0xcad   : > { %v2027_v17 = vpop.eup %2026 }
 0xcae   : > { %v1046_v18 = vsel %vm587_vm2, %v2027_v17, 0.0 }
 0xcaf   : > { %1047 = vadd.xlane.f32.xlu1 %v1046_v18 }
 0xcc0   : > { %1052 = vrot.lane.b32.xlu1 %v990_v4, %s2237_s27  ;;  %v2001_v4 = vld [vmem:[%s2791_s5 + $0x28] sm:$0xff]   ;;  %s2154_s27 = sshll.u32 %s2239_s21, 4  ;;  %s2155_s27 = int_to_ptr.vmem [resolvable:$false] %s2154_s27 }
 0xcc1   : > { %s2156_s23 = scalar_lea.vmem %s2155_s27, 32  ;;  %p2157_p2 = scmp.lt.s32.totalorder %s2744_s29, %s2155_s27 }
 0xcc2   : > { %p2158_p1 = scmp.lt.s32.totalorder %s2156_s23, %s2150_s13 }
 0xcc4   : > { %p2159_p4 = por %p2158_p1, %p2157_p2 }
 0xcc6   : > { %p2160_p0 = pnand %p2159_p4, %p2153_p12 }
 0xd3c   : > { %v1048_v14 = vpop.xlane.xlu1 %1047 }
 0xd3d   : > { %2028 = vrcp.f32 %v1048_v14 }
 0xd40   : > { %v1053_v20 = vpop.permute.xlu1 %1052 }
 0xd41   : > { %v1058_v21 = vsel %vm605_vm3, %v1053_v20, 0 }
 0xd42   : > { %1865 = vmatpush3.bf16.msra.mxu1 %v1058_v21  ;;  %v1280_v21 = vrot.slane %v2660_v32, %v2608_v28 }
 0xd43   : > { %1878 = vmatprep.subr.bf16.mxu1 %v2234_v0 }
 0xd47   : > { %v2029_v22 = vpop.eup %2028 }
 0xd48   : > { %v1050_v23 = vmul.f32 %v2029_v22, %v2027_v17 }
 0xd4a   : > { %v1051_v24 = vpack.c.bf16 %v1050_v23, %v1050_v23 }
 0xd4c   : > { %1867 = vmatmul.mubr.msk.bf16.vlgmr.msra.gmra.mrb[12].mxu1 %vm587_vm2, %v1051_v24 }
 0xd4d   : > { %1882 = vmatprep.mubr.msk.bf16.mxu1 %vm2235_vm0, %v2234_v0  ;;  %1879 = vmatpush3.bf16.msra.mxu1 %v1998_v50 }
 0xd4e   : > { %1880 = vmatprep.subr.bf16.mxu1 %v2234_v0 }
 0xd51   : > { %1881 = vmatpush3.bf16.msra.mxu1 %v1999_v53 }
 0xe1f   : > { %v1094_v26 = vpop.f32.mrb[12].mxu1 }
 0xe20   : > { %v1105_v27 = vpack.c.bf16 %v1094_v26, %v1094_v26  ;;  %v1868_v29 = vpop.f32.mrb[13].mxu1 }
 0xe21   : > { %v1097_v30 = vpop.f32.mrb[14].mxu1 }
 0xe22   : > { %v1869_v31 = vpop.f32.mrb[15].mxu1  ;;  %1875 = vmatmul.mubr.msk.bf16.vlgmr.msra.gmra.mrb[20].mxu0 %vm487_vm1, %v1105_v27 }
 0xe23   : > { %1894 = vmatprep.mubr.msk.bf16.mxu0 %vm2235_vm0, %v2234_v0  ;;  %1887 = vmatpush3.bf16.msra.mxu0 %v2000_v3 }
 0xe24   : > { %1888 = vmatprep.subr.bf16.mxu0 %v2234_v0 }
 0xe27   : > { %1889 = vmatpush3.bf16.msra.mxu0 %v2001_v4 }
 0xe28   : > { %1890 = vmatprep.subr.bf16.mxu0 %v2234_v0 }
 0xe2b   : > { %1891 = vmatpush3.bf16.msra.mxu0 %v2002_v5 }
 0xe2c   : > { %1892 = vmatprep.subr.bf16.mxu0 %v2234_v0 }
 0xe2f   : > { %1893 = vmatpush3.bf16.msra.mxu0 %v2003_v42 }
 0xef5   : > { %v1159_v34 = vpop.f32.mrb[20].mxu0 }
 0xef6   : > { %v1160_v35 = vadd.f32 %v1159_v34, %v1109_v33  ;;  %v1876_v36 = vpop.f32.mrb[21].mxu0 }
 0xef7   : > { %v1162_v37 = vpop.f32.mrb[22].mxu0  ;;  %v2006_v36 = vld [vmem:[%s2824_s24 + $0x4] ss:$16 sps:$4 sm:$0xff]  }
 0xef8   : > { %v1877_v38 = vpop.f32.mrb[23].mxu0  ;;  %v1165_v43 = vadd.f32 %v1160_v35, %v2630_v58  ;;  %v2004_v37 = vld [vmem:[%s2824_s24] ss:$16 sps:$4 sm:$0xff]   ;;  %1446 = vmatprep.subr.bf16.mxu1 %v2006_v36 }
 0xef9   : > { %v2009_v38 = vld [vmem:[%s2824_s24 + $0x24] ss:$16 sps:$4 sm:$0xff]  }
 0xefa   : > { %v1166_v44 = vsel %vm487_vm1, %v1165_v43, 0.0 }
 0xefb   : > { %1167 = vadd.xlane.f32.xlu0 %v1166_v44  ;;  %v2238_v44 = vmov 0  }
 0xf88   : > { %v1168_v45 = vpop.xlane.xlu0 %1167 }
 0xf89   : > { %v1169_v46 = vmul.f32 0.03125, %v1168_v45  ;;  %v2012_v45 = vld [vmem:[%s2824_s24 + $0xc] ss:$16 sps:$4 sm:$0xff]  }
 0xf8b   : > { %v1170_v47 = vsub.f32 %v1165_v43, %v1169_v46  ;;  %v2007_v43 = vld [vmem:[%s2824_s24 + $0x20] ss:$16 sps:$4 sm:$0xff]  }
 0xf8d   : > { %v1171_v48 = vmul.f32 %v1170_v47, %v1170_v47 }
 0xf8f   : > { %v1172_v49 = vsel %vm487_vm1, %v1171_v48, 0.0 }
 0xf90   : > { %1173 = vadd.xlane.f32.xlu1 %v1172_v49  ;;  %v1365_v49 = vrot.slane %v2660_v32, %v911_v51  ;;  %v2013_v51 = vld [vmem:[%s2824_s24 + $0x28] ss:$16 sps:$4 sm:$0xff]  }
0x101d   : > { %v1174_v54 = vpop.xlane.xlu1 %1173 }
0x101e   : > { %v1175_v55 = vmul.f32 0.03125, %v1174_v54  ;;  %v1370_v54 = vrot.slane %v2660_v32, %v916_v52  ;;  %v1381_v32 = vld [vmem:[%s2825_s14] sm:$0xf] }
0x101f   : > { %v1390_v3 = vrot.slane %v1381_v32, %v2573_v61  ;;  %v1394_v4 = vrot.slane %v1381_v32, %v2576_v62  ;;  %v1398_v5 = vrot.slane %v1381_v32, %v2608_v28 }
0x1020   : > { %v1176_v56 = vadd.f32 1e-05, %v1175_v55 }
0x1022   : > { %2030 = vrsqrt.f32 %v1176_v56 }
0x102c   : > { %v2031_v58 = vpop.eup %2030 }
0x102d   : > { %v1178_v59 = vmul.f32 %v2031_v58, %v1170_v47 }
0x102f   : > { %v1183_v63 = vmul.f32 %v1182_v57, %v1178_v59  ;;  %v2010_v57 = vld [vmem:[%s2824_s24 + $0x8] ss:$16 sps:$4 sm:$0xff]   ;;  %v2015_v59 = vld [vmem:[%s2824_s24 + $0x2c] ss:$16 sps:$4 sm:$0xff]  }
0x1031   : > { %v1188_v1 = vadd.f32 %v1187_v60, %v1183_v63 }
0x1033   : > { %v1189_v2 = vpack.c.bf16 %v1188_v1, %v1188_v1 }
0x1035   : > { %1883 = vmatmul.mubr.msk.bf16.vlgmr.msra.gmra.mrb[16].mxu1 %vm487_vm1, %v1189_v2  ;;  %v1386_v2 = vrot.slane %v1381_v32, %v2558_v41  ;;  %v1529_v41 = vand.u32 127, %v654_v39 }
0x1036   : > { %1447 = vmatpush1.bf16.msra.mxu1 %v2004_v37  ;;  %1478 = vmatprep.mubr.bf16.mxu1 %v2238_v44 }
0x1037   : > { %1448 = vmatprep.subr.bf16.mxu1 %v2009_v38  ;;  %v1531_v61 = vadd.s32 256, %v1529_v41 }
0x103a   : > { %1449 = vmatpush1.bf16.msra.mxu1 %v2007_v43 }
0x103b   : > { %1487 = vmatprep.subr.bf16.mxu1 %v2012_v45 }
0x1108   : > { %v1252_v7 = vpop.f32.mrb[16].mxu1 }
0x1109   : > { %v1253_v8 = vadd.f32 %v1736_v6, %v1252_v7  ;;  %v1884_v9 = vpop.f32.mrb[17].mxu1 }
0x110a   : > { %v1255_v10 = vpop.f32.mrb[18].mxu1 }
0x110b   : > { %v1258_v11 = vmul.f32 %v1253_v8, %v1253_v8  ;;  %v1885_v12 = vpop.f32.mrb[19].mxu1 }
0x110d   : > { %v1259_v13 = vmul.f32 %v1258_v11, %v1253_v8 }
0x110f   : > { %v1260_v15 = vmul.f32 0.044715, %v1259_v13 }
0x1111   : > { %v1261_v16 = vadd.f32 %v1260_v15, %v1253_v8 }
0x1113   : > { %v1262_v17 = vmul.f32 0.7978846, %v1261_v16 }
0x1115   : > { %2032 = vtanh.f32 %v1262_v17  ;;  %v1530_v17 = vadd.s32 128, %v1529_v41 }
0x111f   : > { %v2033_v0 = vpop.eup %2032 }
0x1120   : > { %v1264_v18 = vadd.f32 1.0, %v2033_v0  ;;  %v1532_v0 = vadd.s32 384, %v1529_v41 }
0x1122   : > { %v1265_v19 = vmul.f32 0.5, %v1264_v18 }
0x1124   : > { %v1266_v14 = vmul.f32 %v1265_v19, %v1253_v8 }
0x1126   : > { %v1276_v20 = vpack.c.bf16 %v1266_v14, %v1266_v14 }
0x1128   : > { %1895 = vmatmul.mubr.msk.bf16.vlgmr.msra.gmra.mrb[24].mxu0 %vm851_vm4, %v1276_v20 }
0x11fb   : > { %v1342_v22 = vpop.f32.mrb[24].mxu0 }
0x11fc   : > { %v1343_v23 = vadd.f32 %v1342_v22, %v1280_v21  ;;  %v1896_v24 = vpop.f32.mrb[25].mxu0 }
0x11fd   : > { %v1345_v25 = vpop.f32.mrb[26].mxu0 }
0x11fe   : > { %v1897_v26 = vpop.f32.mrb[27].mxu0  ;;  %v1348_v27 = vadd.f32 %v1343_v23, %v1188_v1 }
0x1200   : > { %v1349_v29 = vsel %vm487_vm1, %v1348_v27, 0.0 }
0x1201   : > { %1350 = vadd.xlane.f32.xlu0 %v1349_v29 }
0x128e   : > { %v1351_v30 = vpop.xlane.xlu0 %1350 }
0x128f   : > { %v1352_v31 = vmul.f32 0.03125, %v1351_v30 }
0x1291   : > { %v1353_v33 = vsub.f32 %v1348_v27, %v1352_v31 }
0x1293   : > { %v1354_v34 = vmul.f32 %v1353_v33, %v1353_v33 }
0x1295   : > { %v1355_v35 = vsel %vm487_vm1, %v1354_v34, 0.0 }
0x1296   : > { %1356 = vadd.xlane.f32.xlu0 %v1355_v35 }
0x1323   : > { %v1357_v46 = vpop.xlane.xlu0 %1356 }
0x1324   : > { %v1358_v47 = vmul.f32 0.03125, %v1357_v46 }
0x1326   : > { %v1359_v48 = vadd.f32 1e-05, %v1358_v47 }
0x1328   : > { %2034 = vrsqrt.f32 %v1359_v48 }
0x1332   : > { %v2035_v50 = vpop.eup %2034 }
0x1333   : > { %v1361_v53 = vmul.f32 %v2035_v50, %v1353_v33  ;;  %v1568_v33 = vsub.s32 %v1529_v41, %v2555_v40 }
0x1335   : > { %v1366_v55 = vmul.f32 %v1365_v49, %v1361_v53 }
0x1337   : > { %v1371_v56 = vadd.f32 %v1370_v54, %v1366_v55 }
0x1339   : > { %v1380_v58 = vpack.c.bf16 %v1371_v56, %v1371_v56 }
0x133b   : > { %1761 = vmatmul.mubr.msk.bf16.vlgmr.msra.gmra.mrb[20].mxu1 %vm487_vm1, %v1380_v58 }
0x133c   : > { %1488 = vmatpush1.bf16.msra.mxu1 %v2010_v57  ;;  %1519 = vmatprep.mubr.bf16.mxu1 %v2238_v44 }
0x133d   : > { %1489 = vmatprep.subr.bf16.mxu1 %v2015_v59 }
0x1340   : > { %1490 = vmatpush1.bf16.msra.mxu1 %v2013_v51 }
0x1343   : > { %1762 = vmatmul.mubr.msk.bf16.vlgmr.msra.gmra.mrb[24].mxu1 %vm487_vm1, %v1380_v58 }
0x140e   : > { %v1480_v52 = vpop.f32.mrb[20].mxu1 }
0x140f   : > { %v1482_v60 = vpop.f32.mrb[21].mxu1  ;;  %v1481_v42 = vadd.f32 %v1480_v52, %v1386_v2 }
0x1410   : > { %v1484_v63 = vpop.f32.mrb[22].mxu1  ;;  %v1483_v6 = vadd.f32 %v1482_v60, %v1390_v3 }
0x1411   : > { %v1485_v1 = vpop.f32.mrb[23].mxu1 }
0x1412   : > { %v1533_v13 = vmax.f32 %v1481_v42, %v1483_v6 }
0x1416   : > { %v1521_v7 = vpop.f32.mrb[24].mxu1 }
0x1417   : > { %v1522_v8 = vadd.f32 %v1521_v7, %v1394_v4  ;;  %v1523_v9 = vpop.f32.mrb[25].mxu1 }
0x1418   : > { %v1524_v10 = vadd.f32 %v1523_v9, %v1398_v5  ;;  %v1525_v11 = vpop.f32.mrb[26].mxu1 }
0x1419   : > { %v1526_v12 = vpop.f32.mrb[27].mxu1 }
0x141a   : > { %v1534_v15 = vmax.f32 %v1522_v8, %v1524_v10 }
0x141c   : > { %v1535_v16 = vmax.f32 %v1533_v13, %v1534_v15 }
0x141e   : > { %1536 = vmax.xlane.f32.xlu0 %v1535_v16 }
0x14ab   : > { %v1537_v62 = vpop.xlane.xlu0 %1536 }
0x14ac   : > { %vm1538_vm5 = vcmp.eq.f32.partialorder %v1481_v42, %v1537_v62  ;;  %vm1539_vm6 = vcmp.eq.f32.partialorder %v1483_v6, %v1537_v62  ;;  %vm1540_vm7 = vcmp.eq.f32.partialorder %v1522_v8, %v1537_v62  ;;  %vm1541_vm8 = vcmp.eq.f32.partialorder %v1524_v10, %v1537_v62 }
0x14ad   : > { %v1542_v28 = vsel %vm1538_vm5, %v1529_v41, 512  ;;  %v1543_v18 = vsel %vm1539_vm6, %v1530_v17, 512  ;;  %v1544_v19 = vsel %vm1540_vm7, %v1531_v61, 512  ;;  %v1545_v14 = vsel %vm1541_vm8, %v1532_v0, 512 }
0x14ae   : > { %vm1546_vm9 = vcmp.lt.s32.totalorder %v1542_v28, %v1543_v18  ;;  %vm1548_vm10 = vcmp.lt.s32.totalorder %v1544_v19, %v1545_v14 }
0x14af   : > { %v1547_v20 = vsel %vm1546_vm9, %v1542_v28, %v1543_v18  ;;  %v1549_v21 = vsel %vm1548_vm10, %v1544_v19, %v1545_v14 }
0x14b0   : > { %vm1550_vm11 = vcmp.lt.s32.totalorder %v1547_v20, %v1549_v21 }
0x14b1   : > { %v1551_v22 = vsel %vm1550_vm11, %v1547_v20, %v1549_v21 }
0x14b2   : > { %v1553_v39 = vshra.s32 %v1551_v22, 16  ;;  %v1552_v24 = vand.u32 65535, %v1551_v22 }
0x14b4   : > { %v1555_v23 = vcvt.s32.f32 %v1553_v39  ;;  %v1554_v26 = vcvt.s32.f32 %v1552_v24 }
0x14b6   : > { %1556 = vmin.xlane.f32.xlu0 %v1555_v23 }
0x1543   : > { %v1557_v25 = vpop.xlane.xlu0 %1556 }
0x1544   : > { %vm1558_vm12 = vcmp.eq.f32.partialorder %v1555_v23, %v1557_v25  ;;  %v1563_v29 = vcvt.f32.s32 %v1557_v25 }
0x1545   : > { %v1559_v27 = vsel %vm1558_vm12, %v1554_v26, inf }
0x1546   : > { %1560 = vmin.xlane.f32.xlu0 %v1559_v27  ;;  %v1564_v31 = vshll.u32 %v1563_v29, 16 }
0x15d3   : > { %v1561_v30 = vpop.xlane.xlu0 %1560 }
0x15d4   : > { %v1562_v34 = vcvt.f32.s32 %v1561_v30 }
0x15d6   : > { %v1565_v35 = vadd.s32 %v1564_v31, %v1562_v34 }
0x15d8   : > { %v1569_v36 = vrot.slane %v1565_v35, %v1568_v33 }
0x15da   : > { %1571 = vst.msk [vmem:[%s455_s15] sm:$0x1] %vm1570_vm13, %v1569_v36 }
0x15db   : > { %2163 = shalt.err (!%p2160_p0)
}
0x15dc   : > { %s2164_s16 = scalar_lea.hbm %s2742_s11, 16  ;;  %s2168_s30 = scalar_lea.hbm %s2826_s10, 32 }
0x15dd   : > { %p2165_p9 = scmp.ne.s32.totalorder %s2742_s11, %s2164_s16  ;;  %p2169_p13 = scmp.lt.u32.totalorder %s2742_s11, %s2826_s10 }
0x15de   : > { %p2170_p6 = scmp.lt.u32.totalorder %s2168_s30, %s2164_s16  ;;  %p2172_p3 = scmp.lt.u32.totalorder %s2164_s16, %s2742_s11 }
0x15df   : > { %p2166_p8 = pnand %p2165_p9, %p2445_p5 }
0x15e0   : > { %p2171_p10 = por %p2170_p6, %p2169_p13 }
0x15e1   : > { %p2167_p11 = pneg %p2166_p8 }
0x15e2   : > { %p2173_p7 = por %p2172_p3, %p2171_p10 }
0x15e4   : > { %p2174_p12 = pnand %p2173_p7, %p2167_p11 }
0x15e6   : > { %2177 = shalt.err (!%p2174_p12)
}
0x15e7   : > { %1912 = dma.vmem_to_hbm [thread:$0]  (%p2445_p5), %s2744_s29, 16, %s2742_s11, %s1573_s26  }
0x15e8 PF: > { %s2827_s12 = sld [smem:[#allocation15_spill]]  ;;  %s2828_s13 = sld [smem:[#allocation16_spill]] }
0x15e9   : > { %p2830_p1 = scmp.ge.s32.totalorder %s2224_s20, 2 }
0x15ee   : > { %s1597_s21 = sand.u32 1, %s2827_s12   ;;  %p2829_p2 = scmp.ne.s32.totalorder %s2828_s13, 0 }
0x15ef   : > { %s1598_s27 = scalar_lea.sflag [#allocation4], %s1597_s21 }
0x15f0   : > { %p1929_p4 = pnand %p2830_p1, %p2829_p2 }
0x15f2   : > { %2207 = dma.done.wait (!%p1929_p4), %s1598_s27, 16  }
0x15f3   : > { %2209 = vsyncadd (!%p1929_p4), %s1598_s27, 4294967280  ;;  %s2831_s23 = smov %s2441_s17  ;;  %p26_p0 = scmp.ge.s32.totalorder %s2431_s9, 4  }
0x15f4   : > { %s2832_s17 = smov %s2216_s18  ;;  %s2833_s18 = smov %s2220_s19 }
0x15f5   : > { %s2834_s19 = smov %s2831_s23  ;;  %s2835_s20 = smov %s2431_s9 }
0x15f6   :  { %28 = sbr.rel (!%p26_p0) target bundleno = 11 (0xb), region = 131 }
0x15fd   :  { %1602 = vsyncpa [#allocation3], 1 }
0x15fe   :  { %1604 = vsyncpa [#allocation3 + $0x1], 1 }
0x15ff   :  { %1605 = vsyncpa [#allocation6], 1 }
0x1600   :  { %1606 = vsyncpa [#allocation9], 1 }
0x1601   :  { %1607 = vsyncpa [#allocation4], 1 }
0x1602   :  { %1609 = vsyncpa [#allocation4 + $0x1], 1 }

</bundles_post_ra>
